<compile_context>
chip_gen: v7x
topology: tpu7x:2x2x1
jax: 0.10.0
libtpu: 0.0.40
codegen_flags: <defaults>
</compile_context>

<pallas_src>
import functools
import math

import jax
import jax.numpy as jnp
from jax import lax
from jax.experimental import pallas as pl
from jax.experimental.pallas import tpu as pltpu


# ----------------------------- elementwise helpers ---------------------------

def _gelu_tanh(x):
    # tanh-approx GELU (EUP tanh instead of a ~12-op VALU erf polynomial).
    # Max abs deviation from exact erf-GELU ~3e-4, far inside the test tolerance.
    c = math.sqrt(2.0 / math.pi)
    return 0.5 * x * (1.0 + jnp.tanh(c * (x + 0.044715 * x * x * x)))


def _gelu_erf(x):  # exact GELU (reference only, outside the kernel)
    return 0.5 * x * (1.0 + lax.erf(x * (1.0 / math.sqrt(2.0))))


def _silu(x):
    return x * (1.0 / (1.0 + jnp.exp(-x)))


def _layernorm(x, w, b, eps=1e-5):  # torch nn.LayerNorm over the last dim
    mu = jnp.mean(x, axis=-1, keepdims=True)
    xc = x - mu
    var = jnp.mean(xc * xc, axis=-1, keepdims=True)
    return xc * lax.rsqrt(var + eps) * w + b


def _l2norm(x, eps=1e-12):  # torch F.normalize(dim=-1)
    n = jnp.sqrt(jnp.sum(x * x, axis=-1, keepdims=True))
    return x / jnp.maximum(n, eps)


def _head_layernorm(x, amean, g, b, eps=1e-5):
    # Per-head LayerNorm on (N, D) rows where each Dh-wide column block is one head.
    # Segment mean/var are computed with a block-diagonal averaging matmul, so no
    # lane->sublane relayouts or per-head slices are needed.
    mu = jnp.dot(x, amean, preferred_element_type=jnp.float32)
    xc = x - mu
    var = jnp.dot(xc * xc, amean, preferred_element_type=jnp.float32)
    return xc * lax.rsqrt(var + eps) * g + b


def _head_l2norm(x, amean, head_dim, eps=1e-12):
    ss = jnp.dot(x * x, amean, preferred_element_type=jnp.float32) * float(head_dim)
    return x / jnp.maximum(jnp.sqrt(ss), eps)


# --------------------------------- kernel ------------------------------------

def _performer_kernel(block_b, seq_len, head_dim,
                      x_ref, emb_ref, mask_ref,
                      wstack_ref, wsty_ref, pbd_ref, amean_ref, emask_ref, vec_ref,
                      y_ref):
    f32 = jnp.float32
    bf16 = jnp.bfloat16
    Bb, T, Dh = block_b, seq_len, head_dim
    BT = Bb * T

    x = x_ref[0]                       # (BT, D) f32
    emb = emb_ref[0]                   # (Bb, E) f32
    mask = mask_ref[0]                 # (BT, 1) f32
    D = x.shape[-1]
    E = emb.shape[-1]

    # Packed small per-channel params: one (16, D) f32 block, one DMA.
    vec = vec_ref[...]
    pre_w, pre_b = vec[0:1], vec[1:2]
    bq, bk, bv = vec[2:3], vec[3:4], vec[4:5]
    fa_w, fa_b = vec[5:6], vec[6:7]
    b1, b2 = vec[7:8], vec[8:9]
    post_w, post_b = vec[9:10], vec[10:11]
    sn_w, sn_b = vec[11:12], vec[12:13]
    be_sc, be_sh = vec[13:14], vec[14:15]
    bz = vec[15:16]

    ws = wstack_ref[...]               # (6D, D) bf16 stacked square weights
    wq, wk, wv = ws[0:D], ws[D:2 * D], ws[2 * D:3 * D]
    w1, w2, wz = ws[3 * D:4 * D], ws[4 * D:5 * D], ws[5 * D:6 * D]

    amean = amean_ref[...]             # (D, D)    blockdiag(1/Dh)
    emask = emask_ref[...]             # (H*M, D)  blockdiag(ones)

    # pre_norm + Q/K/V projections (bf16 MXU matmuls, f32 accumulation, all rows).
    h = _layernorm(x, pre_w, pre_b).astype(bf16)
    q = jnp.dot(h, wq, preferred_element_type=f32) + bq
    k = jnp.dot(h, wk, preferred_element_type=f32) + bk
    v = jnp.dot(h, wv, preferred_element_type=f32) + bv

    # Performer feature maps: all heads / batch rows / q & k handled at once.
    qkv = jnp.concatenate([q, k, v], axis=0) * 0.1            # (3*BT, D)
    ln = _head_layernorm(qkv, amean, fa_w, fa_b)              # per-head LayerNorm
    qk = _head_l2norm(ln[:2 * BT], amean, Dh)                 # (2*BT, D)
    vn = ln[2 * BT:]                                          # (BT, D)
    feat = jnp.exp(jnp.clip(
        jnp.dot(qk.astype(bf16), pbd_ref[...], preferred_element_type=f32),
        -15.0, 15.0)) * 0.1                                   # (2*BT, H*M)
    qp = feat[:BT]
    kp = feat[BT:] * mask                                     # (BT, H*M)

    # Linear attention.  Heads stay batched through the block-diagonal projection;
    # only the (small) batch dimension is a static Python loop.
    outs = []
    for b in range(Bb):
        r0 = b * T
        kp_b, qp_b, vn_b = kp[r0:r0 + T], qp[r0:r0 + T], vn[r0:r0 + T]
        kv = lax.dot_general(kp_b, vn_b, (((0,), (0,)), ((), ())),
                             preferred_element_type=f32) * 0.1      # (H*M, D)
        kv = kv * emask                                             # drop cross-head blocks
        outs.append(jnp.dot(qp_b, kv, preferred_element_type=f32) * 0.1)
    qkv_o = outs[0] if Bb == 1 else jnp.concatenate(outs, axis=0)   # (BT, D)
    den = jnp.maximum(jnp.dot(qp * kp, emask, preferred_element_type=f32), 1e-6)
    attn = _head_layernorm(qkv_o / den, amean, fa_w, fa_b)          # (BT, D)

    # proj_out MLP: Linear -> GELU -> Linear, then post_norm + l2norm * sqrt(D).
    a1 = _gelu_tanh(jnp.dot(attn.astype(bf16), w1, preferred_element_type=f32) + b1)
    a2 = jnp.dot(a1.astype(bf16), w2, preferred_element_type=f32) + b2
    pn = _l2norm(_layernorm(a2, post_w, post_b)) * (float(D) ** 0.5)

    # StylizationBlock.
    se = _silu(emb).astype(bf16)
    scale = jnp.dot(se, wsty_ref[:E, :], preferred_element_type=f32) + be_sc   # (Bb, D)
    shift = jnp.dot(se, wsty_ref[E:, :], preferred_element_type=f32) + be_sh
    sb = _layernorm(pn, sn_w, sn_b).reshape(Bb, T, D)
    sb = sb * (1.0 + scale[:, None, :]) + shift[:, None, :]
    so = jnp.dot(_silu(sb.reshape(BT, D)).astype(bf16), wz,
                 preferred_element_type=f32) + bz

    y_ref[0] = x + 0.1 * so


# ------------------------------- param packing --------------------------------

def _pack_params(p, num_head):
    f32 = jnp.float32
    bf16 = jnp.bfloat16
    D = p["wq"].shape[0]
    Dh = D // num_head
    M = p["proj"].shape[1]

    # Six (D, D) weights stacked as one bf16 array (halves weight DMA bytes).
    wstack = jnp.concatenate(
        [p["wq"], p["wk"], p["wv"], p["w1"], p["w2"], p["wz"]], axis=0).astype(bf16)
    # Stylization emb weight split into scale/shift halves, stacked row-wise.
    wsty = jnp.concatenate([p["we"][:, :D], p["we"][:, D:]], axis=0).astype(bf16)
    # Block-diagonal Performer projection (D, H*M): one matmul feeds all heads.
    pbd = jnp.kron(jnp.eye(num_head, dtype=f32), p["proj"].astype(f32)).astype(bf16)
    # Block-diagonal per-head averaging matrix and head-block mask.
    amean = jnp.kron(jnp.eye(num_head, dtype=f32), jnp.full((Dh, Dh), 1.0 / Dh, f32))
    emask = jnp.kron(jnp.eye(num_head, dtype=f32), jnp.ones((M, Dh), f32))
    # All tiny (1, D)/(1, Dh) params packed into one (16, D) array.
    rows = [p["pre_w"], p["pre_b"], p["bq"], p["bk"], p["bv"],
            jnp.tile(p["fa_w"], (1, num_head)), jnp.tile(p["fa_b"], (1, num_head)),
            p["b1"], p["b2"], p["post_w"], p["post_b"],
            p["sn_w"], p["sn_b"], p["be"][:, :D], p["be"][:, D:], p["bz"]]
    vec = jnp.concatenate([jnp.asarray(r, f32).reshape(1, D) for r in rows], axis=0)
    return wstack, wsty, pbd, amean, emask, vec


# --------------------------------- wrapper ------------------------------------

def performer_self_attention(x, emb, src_mask, params, num_head, *, block_b=None):
    B, T, D = x.shape
    E = emb.shape[-1]
    Dh = D // num_head
    f32 = jnp.float32
    # TODO(synk): StylizationBlock's on-the-fly emb_proj (emb dim != time_embed_dim)
    # is not representable with static params; require emb.shape[-1] == time_embed_dim.

    # Process a block of sequences per grid step to amortize the ~0.35us/step overhead.
    # (On v7x with 2 TensorCores, pick block_b <= B//2 when B is large enough.)
    if block_b is None:
        block_b = max(1, min(B, 8))
    G = pl.cdiv(B, block_b)
    Bp = G * block_b

    x = jnp.asarray(x, f32)
    emb = jnp.asarray(emb, f32)
    src_mask = jnp.asarray(src_mask, f32)
    if Bp != B:
        pad = Bp - B
        x = jnp.concatenate([x, jnp.zeros((pad, T, D), f32)], axis=0)
        emb = jnp.concatenate([emb, jnp.zeros((pad, E), f32)], axis=0)
        src_mask = jnp.concatenate([src_mask, jnp.zeros((pad, T, 1), f32)], axis=0)

    # Leading grid axis as an explicit array axis -> every block spans the full
    # trailing dims, so the (8, 128) block constraint is always satisfied.
    x3 = x.reshape(G, block_b * T, D)
    emb3 = emb.reshape(G, block_b, E)
    mask3 = src_mask.reshape(G, block_b * T, 1)
    wstack, wsty, pbd, amean, emask, vec = _pack_params(params, num_head)

    kernel = functools.partial(_performer_kernel, block_b, T, Dh)
    inv = lambda shape: pl.BlockSpec(shape, lambda i: (0, 0))  # grid-invariant weights

    y = pl.pallas_call(
        kernel,
        out_shape=jax.ShapeDtypeStruct((G, block_b * T, D), f32),
        grid_spec=pltpu.PrefetchScalarGridSpec(
            num_scalar_prefetch=0,
            grid=(G,),
            in_specs=[
                pl.BlockSpec((1, block_b * T, D), lambda i: (i, 0, 0)),
                pl.BlockSpec((1, block_b, E), lambda i: (i, 0, 0)),
                pl.BlockSpec((1, block_b * T, 1), lambda i: (i, 0, 0)),
                inv(wstack.shape),
                inv(wsty.shape),
                inv(pbd.shape),
                inv(amean.shape),
                inv(emask.shape),
                inv(vec.shape),
            ],
            out_specs=pl.BlockSpec((1, block_b * T, D), lambda i: (i, 0, 0)),
        ),
        compiler_params=pltpu.CompilerParams(
            dimension_semantics=("parallel",),
            vmem_limit_bytes=32 * 1024 * 1024,
        ),
    )(x3, emb3, mask3, wstack, wsty, pbd, amean, emask, vec)

    return y.reshape(Bp, T, D)[:B]


# ------------------------------ pure-JAX reference ---------------------------

def reference_forward(x, emb, src_mask, p, num_head, *, mixed=True):
    """Straightforward per-head implementation of the module forward.

    mixed=True mirrors the kernel's precision choices (bf16 matmul inputs, f32
    accumulation, tanh GELU); mixed=False is the plain f32 / erf-GELU forward.
    """
    f32 = jnp.float32
    cast = (lambda a: a.astype(jnp.bfloat16)) if mixed else (lambda a: a)
    gelu = _gelu_tanh if mixed else _gelu_erf
    mm = lambda a, b: jnp.dot(cast(a), cast(b), preferred_element_type=f32)

    B, T, D = x.shape
    H, Dh = num_head, D // num_head
    h = _layernorm(x, p["pre_w"], p["pre_b"])
    q = mm(h, p["wq"]) + p["bq"]
    k = mm(h, p["wk"]) + p["bk"]
    v = mm(h, p["wv"]) + p["bv"]
    split = lambda t: t.reshape(B, T, H, Dh).transpose(0, 2, 1, 3) * 0.1
    q, k, v = split(q), split(k), split(v)
    qn = _l2norm(_layernorm(q, p["fa_w"], p["fa_b"]))
    kn = _l2norm(_layernorm(k, p["fa_w"], p["fa_b"]))
    vn = _layernorm(v, p["fa_w"], p["fa_b"])
    P = p["proj"]
    qp = jnp.exp(jnp.clip(jnp.einsum("bhtn,nm->bhtm", cast(qn), cast(P),
                                     preferred_element_type=f32), -15.0, 15.0)) * 0.1
    kp = jnp.exp(jnp.clip(jnp.einsum("bhtn,nm->bhtm", cast(kn), cast(P),
                                     preferred_element_type=f32), -15.0, 15.0)) * 0.1
    kp = kp * src_mask[:, None, :, 0:1]
    kv = jnp.einsum("bhtm,bhtn->bhmn", kp, vn) * 0.1
    qkv = jnp.einsum("bhtm,bhmn->bhtn", qp, kv) * 0.1
    den = jnp.maximum(jnp.sum(qp * kp, axis=-1, keepdims=True), 1e-6)
    out = _layernorm(qkv / den, p["fa_w"], p["fa_b"])
    attn = out.transpose(0, 2, 1, 3).reshape(B, T, D)
    a1 = gelu(mm(attn, p["w1"]) + p["b1"])
    a2 = mm(a1, p["w2"]) + p["b2"]
    pn = _l2norm(_layernorm(a2, p["post_w"], p["post_b"])) * (D ** 0.5)
    eo = mm(_silu(emb), p["we"]) + p["be"]
    scale = eo[:, None, :D]
    shift = eo[:, None, D:]
    sb = _layernorm(pn, p["sn_w"], p["sn_b"]) * (1.0 + scale) + shift
    so = mm(_silu(sb), p["wz"]) + p["bz"]
    return x + 0.1 * so


# ------------------------------ deterministic params -------------------------

def init_params(key, D, H, E, num_features=256):
    Dh = D // H
    ks = jax.random.split(key, 14)
    xav = lambda k, s: jax.random.normal(k, s, jnp.float32) * 0.1          # xavier-ish, gain 0.1
    bias = lambda k, n: jax.random.uniform(k, (1, n), jnp.float32, -0.05, 0.05)
    # Performer projection, replicating the module exactly: randn(Dh, num_features)
    # -> reduced QR (Q has shape (Dh, min(Dh, num_features))) -> column-normalize * Dh^-0.25.
    g = jax.random.normal(ks[0], (Dh, num_features), jnp.float32)
    Q, _ = jnp.linalg.qr(g, mode="reduced")
    col = jnp.maximum(jnp.sqrt(jnp.sum(Q * Q, axis=0, keepdims=True)), 1e-12)
    proj = (Q / col) * (Dh ** -0.25)
    params = dict(
        pre_w=jnp.ones((1, D)), pre_b=jnp.zeros((1, D)),
        post_w=jnp.ones((1, D)), post_b=jnp.zeros((1, D)),
        fa_w=jnp.ones((1, Dh)), fa_b=jnp.zeros((1, Dh)),
        sn_w=jnp.ones((1, D)), sn_b=jnp.zeros((1, D)),
        wq=xav(ks[1], (D, D)), bq=bias(ks[2], D),
        wk=xav(ks[3], (D, D)), bk=bias(ks[4], D),
        wv=xav(ks[5], (D, D)), bv=bias(ks[6], D),
        w1=xav(ks[7], (D, D)), b1=bias(ks[8], D),
        w2=xav(ks[9], (D, D)), b2=bias(ks[10], D),
        we=xav(ks[11], (E, 2 * D)), be=bias(ks[12], 2 * D),
        wz=xav(ks[13], (D, D)), bz=jnp.zeros((1, D)),   # zero_module bias stays zero
        proj=proj,
    )
    return {k: v.astype(jnp.float32) for k, v in params.items()}


# ------------------------------------ main ------------------------------------

if __name__ == "__main__":
    B, T, D, H, E = 2, 8, 32, 4, 32     # seq_len=8, latent_dim=32, num_head=4, time_embed_dim=32
    key = jax.random.PRNGKey(0)
    kx, ke, kparam = jax.random.split(key, 3)
    x = jax.random.normal(kx, (B, T, D), jnp.float32)
    emb = jax.random.normal(ke, (B, E), jnp.float32)
    src_mask = jnp.ones((B, T, 1), jnp.float32)
    src_mask = src_mask.at[1, T - 2:, 0].set(0.0)   # mask tail of second sequence
    params = init_params(kparam, D, H, E)

    y = performer_self_attention(x, emb, src_mask, params, num_head=H)
    y = jax.block_until_ready(y)

    assert y.shape == (B, T, D)
    assert bool(jnp.all(jnp.isfinite(y)))

    y_mixed = reference_forward(x, emb, src_mask, params, H, mixed=True)
    y_f32 = reference_forward(x, emb, src_mask, params, H, mixed=False)
    err_mixed = float(jnp.max(jnp.abs(y - y_mixed)))
    err_f32 = float(jnp.max(jnp.abs(y - y_f32)))
    assert err_mixed < 5e-3, f"mismatch vs precision-matched reference: {err_mixed}"
    assert err_f32 < 5e-2, f"drift vs full-f32 reference: {err_f32}"
    print("KERNEL_OK")
</pallas_src>

<mosaic_0001>
module attributes {stable_mosaic.version = 11 : i64} {
  func.func @_performer_kernel(%arg0: i32, %arg1: memref<1x16x32xf32, #tpu.memory_space<vmem>>, %arg2: memref<1x2x32xf32, #tpu.memory_space<vmem>>, %arg3: memref<1x16x1xf32, #tpu.memory_space<vmem>>, %arg4: memref<192x32xbf16, #tpu.memory_space<vmem>>, %arg5: memref<64x32xbf16, #tpu.memory_space<vmem>>, %arg6: memref<32x32xbf16, #tpu.memory_space<vmem>>, %arg7: memref<32x32xf32, #tpu.memory_space<vmem>>, %arg8: memref<32x32xf32, #tpu.memory_space<vmem>>, %arg9: memref<16x32xf32, #tpu.memory_space<vmem>>, %arg10: memref<1x16x32xf32, #tpu.memory_space<vmem>>) attributes {dimension_semantics = [#tpu.dimension_semantics<parallel>], iteration_bounds = array<i64: 1>, scalar_prefetch = 0 : i64, scratch_operands = 0 : i64, tpu.core_type = #tpu.core_type<tc>, window_params = [{transform_indices = @transform_0, window_bounds = array<i64: 1, 16, 32>}, {transform_indices = @transform_1, window_bounds = array<i64: 1, 2, 32>}, {transform_indices = @transform_2, window_bounds = array<i64: 1, 16, 1>}, {pipeline_mode = #tpu.pipeline_mode<synchronous>, transform_indices = @transform_3, window_bounds = array<i64: 192, 32>}, {pipeline_mode = #tpu.pipeline_mode<synchronous>, transform_indices = @transform_4, window_bounds = array<i64: 64, 32>}, {pipeline_mode = #tpu.pipeline_mode<synchronous>, transform_indices = @transform_5, window_bounds = array<i64: 32, 32>}, {pipeline_mode = #tpu.pipeline_mode<synchronous>, transform_indices = @transform_6, window_bounds = array<i64: 32, 32>}, {pipeline_mode = #tpu.pipeline_mode<synchronous>, transform_indices = @transform_7, window_bounds = array<i64: 32, 32>}, {pipeline_mode = #tpu.pipeline_mode<synchronous>, transform_indices = @transform_8, window_bounds = array<i64: 16, 32>}, {transform_indices = @transform_9, window_bounds = array<i64: 1, 16, 32>}]} {
    %c0 = arith.constant 0 : index
    %c0_0 = arith.constant 0 : index
    %c0_1 = arith.constant 0 : index
    %0 = vector.load %arg1[%c0, %c0_0, %c0_1] : memref<1x16x32xf32, #tpu.memory_space<vmem>>, vector<1x16x32xf32>
    %1 = vector.shape_cast %0 : vector<1x16x32xf32> to vector<16x32xf32>
    %c0_2 = arith.constant 0 : index
    %c0_3 = arith.constant 0 : index
    %c0_4 = arith.constant 0 : index
    %2 = vector.load %arg2[%c0_2, %c0_3, %c0_4] : memref<1x2x32xf32, #tpu.memory_space<vmem>>, vector<1x2x32xf32>
    %3 = vector.shape_cast %2 : vector<1x2x32xf32> to vector<2x32xf32>
    %c0_5 = arith.constant 0 : index
    %c0_6 = arith.constant 0 : index
    %c0_7 = arith.constant 0 : index
    %4 = vector.load %arg3[%c0_5, %c0_6, %c0_7] : memref<1x16x1xf32, #tpu.memory_space<vmem>>, vector<1x16x1xf32>
    %5 = vector.shape_cast %4 : vector<1x16x1xf32> to vector<16x1xf32>
    %c0_8 = arith.constant 0 : index
    %c0_9 = arith.constant 0 : index
    %6 = vector.load %arg9[%c0_8, %c0_9] : memref<16x32xf32, #tpu.memory_space<vmem>>, vector<16x32xf32>
    %7 = vector.extract_strided_slice %6 {offsets = [0, 0], sizes = [1, 32], strides = [1, 1]} : vector<16x32xf32> to vector<1x32xf32>
    %8 = vector.extract_strided_slice %6 {offsets = [1, 0], sizes = [1, 32], strides = [1, 1]} : vector<16x32xf32> to vector<1x32xf32>
    %9 = vector.extract_strided_slice %6 {offsets = [2, 0], sizes = [1, 32], strides = [1, 1]} : vector<16x32xf32> to vector<1x32xf32>
    %10 = vector.extract_strided_slice %6 {offsets = [3, 0], sizes = [1, 32], strides = [1, 1]} : vector<16x32xf32> to vector<1x32xf32>
    %11 = vector.extract_strided_slice %6 {offsets = [4, 0], sizes = [1, 32], strides = [1, 1]} : vector<16x32xf32> to vector<1x32xf32>
    %12 = vector.extract_strided_slice %6 {offsets = [5, 0], sizes = [1, 32], strides = [1, 1]} : vector<16x32xf32> to vector<1x32xf32>
    %13 = vector.extract_strided_slice %6 {offsets = [6, 0], sizes = [1, 32], strides = [1, 1]} : vector<16x32xf32> to vector<1x32xf32>
    %14 = vector.extract_strided_slice %6 {offsets = [7, 0], sizes = [1, 32], strides = [1, 1]} : vector<16x32xf32> to vector<1x32xf32>
    %15 = vector.extract_strided_slice %6 {offsets = [8, 0], sizes = [1, 32], strides = [1, 1]} : vector<16x32xf32> to vector<1x32xf32>
    %16 = vector.extract_strided_slice %6 {offsets = [9, 0], sizes = [1, 32], strides = [1, 1]} : vector<16x32xf32> to vector<1x32xf32>
    %17 = vector.extract_strided_slice %6 {offsets = [10, 0], sizes = [1, 32], strides = [1, 1]} : vector<16x32xf32> to vector<1x32xf32>
    %18 = vector.extract_strided_slice %6 {offsets = [11, 0], sizes = [1, 32], strides = [1, 1]} : vector<16x32xf32> to vector<1x32xf32>
    %19 = vector.extract_strided_slice %6 {offsets = [12, 0], sizes = [1, 32], strides = [1, 1]} : vector<16x32xf32> to vector<1x32xf32>
    %20 = vector.extract_strided_slice %6 {offsets = [13, 0], sizes = [1, 32], strides = [1, 1]} : vector<16x32xf32> to vector<1x32xf32>
    %21 = vector.extract_strided_slice %6 {offsets = [14, 0], sizes = [1, 32], strides = [1, 1]} : vector<16x32xf32> to vector<1x32xf32>
    %22 = vector.extract_strided_slice %6 {offsets = [15, 0], sizes = [1, 32], strides = [1, 1]} : vector<16x32xf32> to vector<1x32xf32>
    %c0_10 = arith.constant 0 : index
    %c0_11 = arith.constant 0 : index
    %23 = vector.load %arg4[%c0_10, %c0_11] : memref<192x32xbf16, #tpu.memory_space<vmem>>, vector<192x32xbf16>
    %24 = vector.extract_strided_slice %23 {offsets = [0, 0], sizes = [32, 32], strides = [1, 1]} : vector<192x32xbf16> to vector<32x32xbf16>
    %25 = vector.extract_strided_slice %23 {offsets = [32, 0], sizes = [32, 32], strides = [1, 1]} : vector<192x32xbf16> to vector<32x32xbf16>
    %26 = vector.extract_strided_slice %23 {offsets = [64, 0], sizes = [32, 32], strides = [1, 1]} : vector<192x32xbf16> to vector<32x32xbf16>
    %27 = vector.extract_strided_slice %23 {offsets = [96, 0], sizes = [32, 32], strides = [1, 1]} : vector<192x32xbf16> to vector<32x32xbf16>
    %28 = vector.extract_strided_slice %23 {offsets = [128, 0], sizes = [32, 32], strides = [1, 1]} : vector<192x32xbf16> to vector<32x32xbf16>
    %29 = vector.extract_strided_slice %23 {offsets = [160, 0], sizes = [32, 32], strides = [1, 1]} : vector<192x32xbf16> to vector<32x32xbf16>
    %c0_12 = arith.constant 0 : index
    %c0_13 = arith.constant 0 : index
    %30 = vector.load %arg7[%c0_12, %c0_13] : memref<32x32xf32, #tpu.memory_space<vmem>>, vector<32x32xf32>
    %c0_14 = arith.constant 0 : index
    %c0_15 = arith.constant 0 : index
    %31 = vector.load %arg8[%c0_14, %c0_15] : memref<32x32xf32, #tpu.memory_space<vmem>>, vector<32x32xf32>
    %cst = arith.constant dense<0.000000e+00> : vector<16xf32>
    %32 = vector.multi_reduction <add>, %1, %cst [1] : vector<16x32xf32> to vector<16xf32>
    %33 = vector.shape_cast %32 : vector<16xf32> to vector<16x1xf32>
    %cst_16 = arith.constant 3.200000e+01 : f32
    %34 = vector.broadcast %cst_16 : f32 to vector<16x1xf32>
    %35 = arith.divf %33, %34 : vector<16x1xf32>
    %36 = vector.broadcast %35 : vector<16x1xf32> to vector<16x32xf32>
    %37 = arith.subf %1, %36 : vector<16x32xf32>
    %38 = arith.mulf %37, %37 : vector<16x32xf32>
    %cst_17 = arith.constant dense<0.000000e+00> : vector<16xf32>
    %39 = vector.multi_reduction <add>, %38, %cst_17 [1] : vector<16x32xf32> to vector<16xf32>
    %40 = vector.shape_cast %39 : vector<16xf32> to vector<16x1xf32>
    %cst_18 = arith.constant 3.200000e+01 : f32
    %41 = vector.broadcast %cst_18 : f32 to vector<16x1xf32>
    %42 = arith.divf %40, %41 : vector<16x1xf32>
    %cst_19 = arith.constant 9.99999974E-6 : f32
    %43 = vector.broadcast %cst_19 : f32 to vector<16x1xf32>
    %44 = arith.addf %42, %43 : vector<16x1xf32>
    %45 = math.rsqrt %44 : vector<16x1xf32>
    %46 = vector.broadcast %45 : vector<16x1xf32> to vector<16x32xf32>
    %47 = arith.mulf %37, %46 : vector<16x32xf32>
    %48 = vector.broadcast %7 : vector<1x32xf32> to vector<16x32xf32>
    %49 = arith.mulf %47, %48 : vector<16x32xf32>
    %50 = vector.broadcast %8 : vector<1x32xf32> to vector<16x32xf32>
    %51 = arith.addf %49, %50 : vector<16x32xf32>
    %52 = arith.truncf %51 : vector<16x32xf32> to vector<16x32xbf16>
    %cst_20 = arith.constant dense<0.000000e+00> : vector<16x32xf32>
    %53 = tpu.matmul %52, %24, %cst_20 {dimension_numbers = #tpu.dot_dimension_numbers<[1], [0], [0], [1], [0, 0, 1, 1], [], []>} : vector<16x32xbf16>, vector<32x32xbf16>, vector<16x32xf32> -> vector<16x32xf32>
    %54 = vector.broadcast %9 : vector<1x32xf32> to vector<16x32xf32>
    %55 = arith.addf %53, %54 : vector<16x32xf32>
    %cst_21 = arith.constant dense<0.000000e+00> : vector<16x32xf32>
    %56 = tpu.matmul %52, %25, %cst_21 {dimension_numbers = #tpu.dot_dimension_numbers<[1], [0], [0], [1], [0, 0, 1, 1], [], []>} : vector<16x32xbf16>, vector<32x32xbf16>, vector<16x32xf32> -> vector<16x32xf32>
    %57 = vector.broadcast %10 : vector<1x32xf32> to vector<16x32xf32>
    %58 = arith.addf %56, %57 : vector<16x32xf32>
    %cst_22 = arith.constant dense<0.000000e+00> : vector<16x32xf32>
    %59 = tpu.matmul %52, %26, %cst_22 {dimension_numbers = #tpu.dot_dimension_numbers<[1], [0], [0], [1], [0, 0, 1, 1], [], []>} : vector<16x32xbf16>, vector<32x32xbf16>, vector<16x32xf32> -> vector<16x32xf32>
    %60 = vector.broadcast %11 : vector<1x32xf32> to vector<16x32xf32>
    %61 = arith.addf %59, %60 : vector<16x32xf32>
    %62 = tpu.concatenate %55, %58, %61 in 0 : vector<16x32xf32>, vector<16x32xf32>, vector<16x32xf32> -> vector<48x32xf32>
    %cst_23 = arith.constant 1.000000e-01 : f32
    %63 = vector.broadcast %cst_23 : f32 to vector<48x32xf32>
    %64 = arith.mulf %62, %63 : vector<48x32xf32>
    %cst_24 = arith.constant dense<0.000000e+00> : vector<48x32xf32>
    %65 = tpu.matmul %64, %30, %cst_24 {dimension_numbers = #tpu.dot_dimension_numbers<[1], [0], [0], [1], [0, 0, 1, 1], [], []>} : vector<48x32xf32>, vector<32x32xf32>, vector<48x32xf32> -> vector<48x32xf32>
    %66 = arith.subf %64, %65 : vector<48x32xf32>
    %67 = arith.mulf %66, %66 : vector<48x32xf32>
    %cst_25 = arith.constant dense<0.000000e+00> : vector<48x32xf32>
    %68 = tpu.matmul %67, %30, %cst_25 {dimension_numbers = #tpu.dot_dimension_numbers<[1], [0], [0], [1], [0, 0, 1, 1], [], []>} : vector<48x32xf32>, vector<32x32xf32>, vector<48x32xf32> -> vector<48x32xf32>
    %cst_26 = arith.constant 9.99999974E-6 : f32
    %69 = vector.broadcast %cst_26 : f32 to vector<48x32xf32>
    %70 = arith.addf %68, %69 : vector<48x32xf32>
    %71 = math.rsqrt %70 : vector<48x32xf32>
    %72 = arith.mulf %66, %71 : vector<48x32xf32>
    %73 = vector.broadcast %12 : vector<1x32xf32> to vector<48x32xf32>
    %74 = arith.mulf %72, %73 : vector<48x32xf32>
    %75 = vector.broadcast %13 : vector<1x32xf32> to vector<48x32xf32>
    %76 = arith.addf %74, %75 : vector<48x32xf32>
    %77 = vector.extract_strided_slice %76 {offsets = [0, 0], sizes = [32, 32], strides = [1, 1]} : vector<48x32xf32> to vector<32x32xf32>
    %78 = arith.mulf %77, %77 : vector<32x32xf32>
    %cst_27 = arith.constant dense<0.000000e+00> : vector<32x32xf32>
    %79 = tpu.matmul %78, %30, %cst_27 {dimension_numbers = #tpu.dot_dimension_numbers<[1], [0], [0], [1], [0, 0, 1, 1], [], []>} : vector<32x32xf32>, vector<32x32xf32>, vector<32x32xf32> -> vector<32x32xf32>
    %cst_28 = arith.constant 8.000000e+00 : f32
    %80 = vector.broadcast %cst_28 : f32 to vector<32x32xf32>
    %81 = arith.mulf %79, %80 : vector<32x32xf32>
    %82 = math.sqrt %81 : vector<32x32xf32>
    %cst_29 = arith.constant 9.99999996E-13 : f32
    %83 = vector.broadcast %cst_29 : f32 to vector<32x32xf32>
    %84 = arith.maximumf %82, %83 : vector<32x32xf32>
    %85 = arith.divf %77, %84 : vector<32x32xf32>
    %86 = vector.extract_strided_slice %76 {offsets = [32, 0], sizes = [16, 32], strides = [1, 1]} : vector<48x32xf32> to vector<16x32xf32>
    %87 = arith.truncf %85 : vector<32x32xf32> to vector<32x32xbf16>
    %c0_30 = arith.constant 0 : index
    %c0_31 = arith.constant 0 : index
    %88 = vector.load %arg6[%c0_30, %c0_31] : memref<32x32xbf16, #tpu.memory_space<vmem>>, vector<32x32xbf16>
    %cst_32 = arith.constant dense<0.000000e+00> : vector<32x32xf32>
    %89 = tpu.matmul %87, %88, %cst_32 {dimension_numbers = #tpu.dot_dimension_numbers<[1], [0], [0], [1], [0, 0, 1, 1], [], []>} : vector<32x32xbf16>, vector<32x32xbf16>, vector<32x32xf32> -> vector<32x32xf32>
    %cst_33 = arith.constant -1.500000e+01 : f32
    %cst_34 = arith.constant 1.500000e+01 : f32
    %90 = vector.broadcast %cst_33 : f32 to vector<32x32xf32>
    %91 = arith.maximumf %90, %89 : vector<32x32xf32>
    %92 = vector.broadcast %cst_34 : f32 to vector<32x32xf32>
    %93 = arith.minimumf %92, %91 : vector<32x32xf32>
    %94 = math.exp %93 : vector<32x32xf32>
    %cst_35 = arith.constant 1.000000e-01 : f32
    %95 = vector.broadcast %cst_35 : f32 to vector<32x32xf32>
    %96 = arith.mulf %94, %95 : vector<32x32xf32>
    %97 = vector.extract_strided_slice %96 {offsets = [0, 0], sizes = [16, 32], strides = [1, 1]} : vector<32x32xf32> to vector<16x32xf32>
    %98 = vector.extract_strided_slice %96 {offsets = [16, 0], sizes = [16, 32], strides = [1, 1]} : vector<32x32xf32> to vector<16x32xf32>
    %99 = vector.broadcast %5 : vector<16x1xf32> to vector<16x32xf32>
    %100 = arith.mulf %98, %99 : vector<16x32xf32>
    %101 = vector.extract_strided_slice %100 {offsets = [0, 0], sizes = [8, 32], strides = [1, 1]} : vector<16x32xf32> to vector<8x32xf32>
    %102 = vector.extract_strided_slice %97 {offsets = [0, 0], sizes = [8, 32], strides = [1, 1]} : vector<16x32xf32> to vector<8x32xf32>
    %103 = vector.extract_strided_slice %86 {offsets = [0, 0], sizes = [8, 32], strides = [1, 1]} : vector<16x32xf32> to vector<8x32xf32>
    %cst_36 = arith.constant dense<0.000000e+00> : vector<32x32xf32>
    %104 = tpu.matmul %101, %103, %cst_36 {dimension_numbers = #tpu.dot_dimension_numbers<[0], [0], [1], [1], [0, 1, 1, 1], [], []>} : vector<8x32xf32>, vector<8x32xf32>, vector<32x32xf32> -> vector<32x32xf32>
    %cst_37 = arith.constant 1.000000e-01 : f32
    %105 = vector.broadcast %cst_37 : f32 to vector<32x32xf32>
    %106 = arith.mulf %104, %105 : vector<32x32xf32>
    %107 = arith.mulf %106, %31 : vector<32x32xf32>
    %cst_38 = arith.constant dense<0.000000e+00> : vector<8x32xf32>
    %108 = tpu.matmul %102, %107, %cst_38 {dimension_numbers = #tpu.dot_dimension_numbers<[1], [0], [0], [1], [0, 0, 1, 1], [], []>} : vector<8x32xf32>, vector<32x32xf32>, vector<8x32xf32> -> vector<8x32xf32>
    %cst_39 = arith.constant 1.000000e-01 : f32
    %109 = vector.broadcast %cst_39 : f32 to vector<8x32xf32>
    %110 = arith.mulf %108, %109 : vector<8x32xf32>
    %111 = vector.extract_strided_slice %100 {offsets = [8, 0], sizes = [8, 32], strides = [1, 1]} : vector<16x32xf32> to vector<8x32xf32>
    %112 = vector.extract_strided_slice %97 {offsets = [8, 0], sizes = [8, 32], strides = [1, 1]} : vector<16x32xf32> to vector<8x32xf32>
    %113 = vector.extract_strided_slice %86 {offsets = [8, 0], sizes = [8, 32], strides = [1, 1]} : vector<16x32xf32> to vector<8x32xf32>
    %cst_40 = arith.constant dense<0.000000e+00> : vector<32x32xf32>
    %114 = tpu.matmul %111, %113, %cst_40 {dimension_numbers = #tpu.dot_dimension_numbers<[0], [0], [1], [1], [0, 1, 1, 1], [], []>} : vector<8x32xf32>, vector<8x32xf32>, vector<32x32xf32> -> vector<32x32xf32>
    %cst_41 = arith.constant 1.000000e-01 : f32
    %115 = vector.broadcast %cst_41 : f32 to vector<32x32xf32>
    %116 = arith.mulf %114, %115 : vector<32x32xf32>
    %117 = arith.mulf %116, %31 : vector<32x32xf32>
    %cst_42 = arith.constant dense<0.000000e+00> : vector<8x32xf32>
    %118 = tpu.matmul %112, %117, %cst_42 {dimension_numbers = #tpu.dot_dimension_numbers<[1], [0], [0], [1], [0, 0, 1, 1], [], []>} : vector<8x32xf32>, vector<32x32xf32>, vector<8x32xf32> -> vector<8x32xf32>
    %cst_43 = arith.constant 1.000000e-01 : f32
    %119 = vector.broadcast %cst_43 : f32 to vector<8x32xf32>
    %120 = arith.mulf %118, %119 : vector<8x32xf32>
    %121 = tpu.concatenate %110, %120 in 0 : vector<8x32xf32>, vector<8x32xf32> -> vector<16x32xf32>
    %122 = arith.mulf %97, %100 : vector<16x32xf32>
    %cst_44 = arith.constant dense<0.000000e+00> : vector<16x32xf32>
    %123 = tpu.matmul %122, %31, %cst_44 {dimension_numbers = #tpu.dot_dimension_numbers<[1], [0], [0], [1], [0, 0, 1, 1], [], []>} : vector<16x32xf32>, vector<32x32xf32>, vector<16x32xf32> -> vector<16x32xf32>
    %cst_45 = arith.constant 9.99999997E-7 : f32
    %124 = vector.broadcast %cst_45 : f32 to vector<16x32xf32>
    %125 = arith.maximumf %123, %124 : vector<16x32xf32>
    %126 = arith.divf %121, %125 : vector<16x32xf32>
    %cst_46 = arith.constant dense<0.000000e+00> : vector<16x32xf32>
    %127 = tpu.matmul %126, %30, %cst_46 {dimension_numbers = #tpu.dot_dimension_numbers<[1], [0], [0], [1], [0, 0, 1, 1], [], []>} : vector<16x32xf32>, vector<32x32xf32>, vector<16x32xf32> -> vector<16x32xf32>
    %128 = arith.subf %126, %127 : vector<16x32xf32>
    %129 = arith.mulf %128, %128 : vector<16x32xf32>
    %cst_47 = arith.constant dense<0.000000e+00> : vector<16x32xf32>
    %130 = tpu.matmul %129, %30, %cst_47 {dimension_numbers = #tpu.dot_dimension_numbers<[1], [0], [0], [1], [0, 0, 1, 1], [], []>} : vector<16x32xf32>, vector<32x32xf32>, vector<16x32xf32> -> vector<16x32xf32>
    %cst_48 = arith.constant 9.99999974E-6 : f32
    %131 = vector.broadcast %cst_48 : f32 to vector<16x32xf32>
    %132 = arith.addf %130, %131 : vector<16x32xf32>
    %133 = math.rsqrt %132 : vector<16x32xf32>
    %134 = arith.mulf %128, %133 : vector<16x32xf32>
    %135 = vector.broadcast %12 : vector<1x32xf32> to vector<16x32xf32>
    %136 = arith.mulf %134, %135 : vector<16x32xf32>
    %137 = vector.broadcast %13 : vector<1x32xf32> to vector<16x32xf32>
    %138 = arith.addf %136, %137 : vector<16x32xf32>
    %139 = arith.truncf %138 : vector<16x32xf32> to vector<16x32xbf16>
    %cst_49 = arith.constant dense<0.000000e+00> : vector<16x32xf32>
    %140 = tpu.matmul %139, %27, %cst_49 {dimension_numbers = #tpu.dot_dimension_numbers<[1], [0], [0], [1], [0, 0, 1, 1], [], []>} : vector<16x32xbf16>, vector<32x32xbf16>, vector<16x32xf32> -> vector<16x32xf32>
    %141 = vector.broadcast %14 : vector<1x32xf32> to vector<16x32xf32>
    %142 = arith.addf %140, %141 : vector<16x32xf32>
    %cst_50 = arith.constant 5.000000e-01 : f32
    %143 = vector.broadcast %cst_50 : f32 to vector<16x32xf32>
    %144 = arith.mulf %143, %142 : vector<16x32xf32>
    %cst_51 = arith.constant 4.471500e-02 : f32
    %145 = vector.broadcast %cst_51 : f32 to vector<16x32xf32>
    %146 = arith.mulf %145, %142 : vector<16x32xf32>
    %147 = arith.mulf %146, %142 : vector<16x32xf32>
    %148 = arith.mulf %147, %142 : vector<16x32xf32>
    %149 = arith.addf %142, %148 : vector<16x32xf32>
    %cst_52 = arith.constant 0.797884583 : f32
    %150 = vector.broadcast %cst_52 : f32 to vector<16x32xf32>
    %151 = arith.mulf %150, %149 : vector<16x32xf32>
    %152 = math.tanh %151 : vector<16x32xf32>
    %cst_53 = arith.constant 1.000000e+00 : f32
    %153 = vector.broadcast %cst_53 : f32 to vector<16x32xf32>
    %154 = arith.addf %153, %152 : vector<16x32xf32>
    %155 = arith.mulf %144, %154 : vector<16x32xf32>
    %156 = arith.truncf %155 : vector<16x32xf32> to vector<16x32xbf16>
    %cst_54 = arith.constant dense<0.000000e+00> : vector<16x32xf32>
    %157 = tpu.matmul %156, %28, %cst_54 {dimension_numbers = #tpu.dot_dimension_numbers<[1], [0], [0], [1], [0, 0, 1, 1], [], []>} : vector<16x32xbf16>, vector<32x32xbf16>, vector<16x32xf32> -> vector<16x32xf32>
    %158 = vector.broadcast %15 : vector<1x32xf32> to vector<16x32xf32>
    %159 = arith.addf %157, %158 : vector<16x32xf32>
    %cst_55 = arith.constant dense<0.000000e+00> : vector<16xf32>
    %160 = vector.multi_reduction <add>, %159, %cst_55 [1] : vector<16x32xf32> to vector<16xf32>
    %161 = vector.shape_cast %160 : vector<16xf32> to vector<16x1xf32>
    %cst_56 = arith.constant 3.200000e+01 : f32
    %162 = vector.broadcast %cst_56 : f32 to vector<16x1xf32>
    %163 = arith.divf %161, %162 : vector<16x1xf32>
    %164 = vector.broadcast %163 : vector<16x1xf32> to vector<16x32xf32>
    %165 = arith.subf %159, %164 : vector<16x32xf32>
    %166 = arith.mulf %165, %165 : vector<16x32xf32>
    %cst_57 = arith.constant dense<0.000000e+00> : vector<16xf32>
    %167 = vector.multi_reduction <add>, %166, %cst_57 [1] : vector<16x32xf32> to vector<16xf32>
    %168 = vector.shape_cast %167 : vector<16xf32> to vector<16x1xf32>
    %cst_58 = arith.constant 3.200000e+01 : f32
    %169 = vector.broadcast %cst_58 : f32 to vector<16x1xf32>
    %170 = arith.divf %168, %169 : vector<16x1xf32>
    %cst_59 = arith.constant 9.99999974E-6 : f32
    %171 = vector.broadcast %cst_59 : f32 to vector<16x1xf32>
    %172 = arith.addf %170, %171 : vector<16x1xf32>
    %173 = math.rsqrt %172 : vector<16x1xf32>
    %174 = vector.broadcast %173 : vector<16x1xf32> to vector<16x32xf32>
    %175 = arith.mulf %165, %174 : vector<16x32xf32>
    %176 = vector.broadcast %16 : vector<1x32xf32> to vector<16x32xf32>
    %177 = arith.mulf %175, %176 : vector<16x32xf32>
    %178 = vector.broadcast %17 : vector<1x32xf32> to vector<16x32xf32>
    %179 = arith.addf %177, %178 : vector<16x32xf32>
    %180 = arith.mulf %179, %179 : vector<16x32xf32>
    %cst_60 = arith.constant dense<0.000000e+00> : vector<16xf32>
    %181 = vector.multi_reduction <add>, %180, %cst_60 [1] : vector<16x32xf32> to vector<16xf32>
    %182 = vector.shape_cast %181 : vector<16xf32> to vector<16x1xf32>
    %183 = math.sqrt %182 : vector<16x1xf32>
    %cst_61 = arith.constant 9.99999996E-13 : f32
    %184 = vector.broadcast %cst_61 : f32 to vector<16x1xf32>
    %185 = arith.maximumf %183, %184 : vector<16x1xf32>
    %186 = vector.broadcast %185 : vector<16x1xf32> to vector<16x32xf32>
    %187 = arith.divf %179, %186 : vector<16x32xf32>
    %cst_62 = arith.constant 5.65685415 : f32
    %188 = vector.broadcast %cst_62 : f32 to vector<16x32xf32>
    %189 = arith.mulf %187, %188 : vector<16x32xf32>
    %cst_63 = arith.constant 0.000000e+00 : f32
    %190 = vector.broadcast %cst_63 : f32 to vector<2x32xf32>
    %191 = arith.subf %190, %3 : vector<2x32xf32>
    %192 = math.exp %191 : vector<2x32xf32>
    %cst_64 = arith.constant 1.000000e+00 : f32
    %193 = vector.broadcast %cst_64 : f32 to vector<2x32xf32>
    %194 = arith.addf %193, %192 : vector<2x32xf32>
    %cst_65 = arith.constant 1.000000e+00 : f32
    %195 = vector.broadcast %cst_65 : f32 to vector<2x32xf32>
    %196 = arith.divf %195, %194 : vector<2x32xf32>
    %197 = arith.mulf %3, %196 : vector<2x32xf32>
    %198 = arith.truncf %197 : vector<2x32xf32> to vector<2x32xbf16>
    %c0_66 = arith.constant 0 : index
    %c0_67 = arith.constant 0 : index
    %199 = vector.load %arg5[%c0_66, %c0_67] : memref<64x32xbf16, #tpu.memory_space<vmem>>, vector<32x32xbf16>
    %cst_68 = arith.constant dense<0.000000e+00> : vector<2x32xf32>
    %200 = tpu.matmul %198, %199, %cst_68 {dimension_numbers = #tpu.dot_dimension_numbers<[1], [0], [0], [1], [0, 0, 1, 1], [], []>} : vector<2x32xbf16>, vector<32x32xbf16>, vector<2x32xf32> -> vector<2x32xf32>
    %201 = vector.broadcast %20 : vector<1x32xf32> to vector<2x32xf32>
    %202 = arith.addf %200, %201 : vector<2x32xf32>
    %c32 = arith.constant 32 : index
    %c0_69 = arith.constant 0 : index
    %203 = vector.load %arg5[%c32, %c0_69] : memref<64x32xbf16, #tpu.memory_space<vmem>>, vector<32x32xbf16>
    %cst_70 = arith.constant dense<0.000000e+00> : vector<2x32xf32>
    %204 = tpu.matmul %198, %203, %cst_70 {dimension_numbers = #tpu.dot_dimension_numbers<[1], [0], [0], [1], [0, 0, 1, 1], [], []>} : vector<2x32xbf16>, vector<32x32xbf16>, vector<2x32xf32> -> vector<2x32xf32>
    %205 = vector.broadcast %21 : vector<1x32xf32> to vector<2x32xf32>
    %206 = arith.addf %204, %205 : vector<2x32xf32>
    %cst_71 = arith.constant dense<0.000000e+00> : vector<16xf32>
    %207 = vector.multi_reduction <add>, %189, %cst_71 [1] : vector<16x32xf32> to vector<16xf32>
    %208 = vector.shape_cast %207 : vector<16xf32> to vector<16x1xf32>
    %cst_72 = arith.constant 3.200000e+01 : f32
    %209 = vector.broadcast %cst_72 : f32 to vector<16x1xf32>
    %210 = arith.divf %208, %209 : vector<16x1xf32>
    %211 = vector.broadcast %210 : vector<16x1xf32> to vector<16x32xf32>
    %212 = arith.subf %189, %211 : vector<16x32xf32>
    %213 = arith.mulf %212, %212 : vector<16x32xf32>
    %cst_73 = arith.constant dense<0.000000e+00> : vector<16xf32>
    %214 = vector.multi_reduction <add>, %213, %cst_73 [1] : vector<16x32xf32> to vector<16xf32>
    %215 = vector.shape_cast %214 : vector<16xf32> to vector<16x1xf32>
    %cst_74 = arith.constant 3.200000e+01 : f32
    %216 = vector.broadcast %cst_74 : f32 to vector<16x1xf32>
    %217 = arith.divf %215, %216 : vector<16x1xf32>
    %cst_75 = arith.constant 9.99999974E-6 : f32
    %218 = vector.broadcast %cst_75 : f32 to vector<16x1xf32>
    %219 = arith.addf %217, %218 : vector<16x1xf32>
    %220 = math.rsqrt %219 : vector<16x1xf32>
    %221 = vector.broadcast %220 : vector<16x1xf32> to vector<16x32xf32>
    %222 = arith.mulf %212, %221 : vector<16x32xf32>
    %223 = vector.broadcast %18 : vector<1x32xf32> to vector<16x32xf32>
    %224 = arith.mulf %222, %223 : vector<16x32xf32>
    %225 = vector.broadcast %19 : vector<1x32xf32> to vector<16x32xf32>
    %226 = arith.addf %224, %225 : vector<16x32xf32>
    %227 = vector.shape_cast %226 : vector<16x32xf32> to vector<2x8x32xf32>
    %228 = vector.shape_cast %202 : vector<2x32xf32> to vector<2x1x32xf32>
    %cst_76 = arith.constant 1.000000e+00 : f32
    %229 = vector.broadcast %cst_76 : f32 to vector<2x1x32xf32>
    %230 = arith.addf %229, %228 : vector<2x1x32xf32>
    %231 = vector.broadcast %230 : vector<2x1x32xf32> to vector<2x8x32xf32>
    %232 = arith.mulf %227, %231 : vector<2x8x32xf32>
    %233 = vector.shape_cast %206 : vector<2x32xf32> to vector<2x1x32xf32>
    %234 = vector.broadcast %233 : vector<2x1x32xf32> to vector<2x8x32xf32>
    %235 = arith.addf %232, %234 : vector<2x8x32xf32>
    %236 = vector.shape_cast %235 : vector<2x8x32xf32> to vector<16x32xf32>
    %cst_77 = arith.constant 0.000000e+00 : f32
    %237 = vector.broadcast %cst_77 : f32 to vector<16x32xf32>
    %238 = arith.subf %237, %236 : vector<16x32xf32>
    %239 = math.exp %238 : vector<16x32xf32>
    %cst_78 = arith.constant 1.000000e+00 : f32
    %240 = vector.broadcast %cst_78 : f32 to vector<16x32xf32>
    %241 = arith.addf %240, %239 : vector<16x32xf32>
    %cst_79 = arith.constant 1.000000e+00 : f32
    %242 = vector.broadcast %cst_79 : f32 to vector<16x32xf32>
    %243 = arith.divf %242, %241 : vector<16x32xf32>
    %244 = arith.mulf %236, %243 : vector<16x32xf32>
    %245 = arith.truncf %244 : vector<16x32xf32> to vector<16x32xbf16>
    %cst_80 = arith.constant dense<0.000000e+00> : vector<16x32xf32>
    %246 = tpu.matmul %245, %29, %cst_80 {dimension_numbers = #tpu.dot_dimension_numbers<[1], [0], [0], [1], [0, 0, 1, 1], [], []>} : vector<16x32xbf16>, vector<32x32xbf16>, vector<16x32xf32> -> vector<16x32xf32>
    %247 = vector.broadcast %22 : vector<1x32xf32> to vector<16x32xf32>
    %248 = arith.addf %246, %247 : vector<16x32xf32>
    %cst_81 = arith.constant 1.000000e-01 : f32
    %249 = vector.broadcast %cst_81 : f32 to vector<16x32xf32>
    %250 = arith.mulf %249, %248 : vector<16x32xf32>
    %251 = arith.addf %1, %250 : vector<16x32xf32>
    %c0_82 = arith.constant 0 : index
    %c0_83 = arith.constant 0 : index
    %c0_84 = arith.constant 0 : index
    %252 = vector.load %arg10[%c0_82, %c0_83, %c0_84] : memref<1x16x32xf32, #tpu.memory_space<vmem>>, vector<1x16x32xf32>
    %253 = vector.shape_cast %252 : vector<1x16x32xf32> to vector<16x32xf32>
    %254 = vector.shape_cast %251 : vector<16x32xf32> to vector<1x16x32xf32>
    tpu.vector_store %arg10[%c0_82, %c0_83, %c0_84], %254 {strides = array<i32>} : memref<1x16x32xf32, #tpu.memory_space<vmem>>, vector<1x16x32xf32>,
    return
  }
  func.func @transform_0(%arg0: i32) -> (i32, i32, i32) {
    %c0_i32 = arith.constant 0 : i32
    %c0_i32_0 = arith.constant 0 : i32
    %c0_i32_1 = arith.constant 0 : i32
    return %arg0, %c0_i32, %c0_i32_0 : i32, i32, i32
  }
  func.func @transform_1(%arg0: i32) -> (i32, i32, i32) {
    %c0_i32 = arith.constant 0 : i32
    %c0_i32_0 = arith.constant 0 : i32
    %c0_i32_1 = arith.constant 0 : i32
    return %arg0, %c0_i32, %c0_i32_0 : i32, i32, i32
  }
  func.func @transform_2(%arg0: i32) -> (i32, i32, i32) {
    %c0_i32 = arith.constant 0 : i32
    %c0_i32_0 = arith.constant 0 : i32
    %c0_i32_1 = arith.constant 0 : i32
    return %arg0, %c0_i32, %c0_i32_0 : i32, i32, i32
  }
  func.func @transform_3(%arg0: i32) -> (i32, i32) {
    %c0_i32 = arith.constant 0 : i32
    %c0_i32_0 = arith.constant 0 : i32
    %c0_i32_1 = arith.constant 0 : i32
    return %c0_i32, %c0_i32_0 : i32, i32
  }
  func.func @transform_4(%arg0: i32) -> (i32, i32) {
    %c0_i32 = arith.constant 0 : i32
    %c0_i32_0 = arith.constant 0 : i32
    %c0_i32_1 = arith.constant 0 : i32
    return %c0_i32, %c0_i32_0 : i32, i32
  }
  func.func @transform_5(%arg0: i32) -> (i32, i32) {
    %c0_i32 = arith.constant 0 : i32
    %c0_i32_0 = arith.constant 0 : i32
    %c0_i32_1 = arith.constant 0 : i32
    return %c0_i32, %c0_i32_0 : i32, i32
  }
  func.func @transform_6(%arg0: i32) -> (i32, i32) {
    %c0_i32 = arith.constant 0 : i32
    %c0_i32_0 = arith.constant 0 : i32
    %c0_i32_1 = arith.constant 0 : i32
    return %c0_i32, %c0_i32_0 : i32, i32
  }
  func.func @transform_7(%arg0: i32) -> (i32, i32) {
    %c0_i32 = arith.constant 0 : i32
    %c0_i32_0 = arith.constant 0 : i32
    %c0_i32_1 = arith.constant 0 : i32
    return %c0_i32, %c0_i32_0 : i32, i32
  }
  func.func @transform_8(%arg0: i32) -> (i32, i32) {
    %c0_i32 = arith.constant 0 : i32
    %c0_i32_0 = arith.constant 0 : i32
    %c0_i32_1 = arith.constant 0 : i32
    return %c0_i32, %c0_i32_0 : i32, i32
  }
  func.func @transform_9(%arg0: i32) -> (i32, i32, i32) {
    %c0_i32 = arith.constant 0 : i32
    %c0_i32_0 = arith.constant 0 : i32
    %c0_i32_1 = arith.constant 0 : i32
    return %arg0, %c0_i32, %c0_i32_0 : i32, i32, i32
  }
}

</mosaic_0001>

<bundles_post_ra>
// kernel: tpu_custom_call.1
= control target key start
LH: loop header
LB: loop body
LE: loop exit
PB: predicated region body
PF: predicated region fallthrough
CT: control target
= control target key end

     0   :  { %vm73_vm0 = vcmask 261120   ;;  %s3011_s0 = inlined_call_operand.vmem [shape: f32[1,16,32], index: 0, kind: input, shape index: {}]   ;;  %s3012_s1 = inlined_call_operand.vmem [shape: f32[1,2,32], index: 1, kind: input, shape index: {}]   ;;  %s3013_s2 = inlined_call_operand.vmem [shape: f32[1,16,1], index: 2, kind: input, shape index: {}]   ;;  %s3014_s3 = inlined_call_operand.vmem [shape: bf16[192,32], index: 3, kind: input, shape index: {}]   ;;  %s3015_s4 = inlined_call_operand.vmem [shape: bf16[64,32], index: 4, kind: input, shape index: {}]   ;;  %s3016_s5 = inlined_call_operand.vmem [shape: bf16[32,32], index: 5, kind: input, shape index: {}]   ;;  %s3017_s6 = inlined_call_operand.vmem [shape: f32[32,32], index: 6, kind: input, shape index: {}]   ;;  %s3018_s7 = inlined_call_operand.vmem [shape: f32[32,32], index: 7, kind: input, shape index: {}]   ;;  %s3019_s8 = inlined_call_operand.vmem [shape: f32[16,32], index: 8, kind: input, shape index: {}]   ;;  %s3020_s9 = inlined_call_operand.hbm [shape: f32[1,16,32], index: 9, kind: output, shape index: {}]  }
   0x1   :  { %v34_v0 = vld [vmem:[%s3011_s0] sm:$0xff]  ;;  %v35_v1 = vld [vmem:[%s3011_s0 + $0x8] sm:$0xff] }
   0x2   :  { %v74_v2 = vsel %vm73_vm0, %v34_v0, 0.0  ;;  %v77_v3 = vsel %vm73_vm0, %v35_v1, 0.0 }
   0x3   :  { %75 = vadd.xlane.f32.xlu0 %v74_v2 }
   0x7   :  { %78 = vadd.xlane.f32.xlu0 %v77_v3 }
   0x8   :  { %14 = vsyncpa [#allocation3], 0  ;;  %v2468_v14 = vld [vmem:[%s3014_s3] sm:$0xff]   ;;  %v2469_v15 = vld [vmem:[%s3014_s3 + $0x10] sm:$0xff]   ;;  %v2592_v16 = vmov 0.0   ;;  %vm2593_vm1 = vmmov 0   ;;  %v101_v26 = vlaneseq }
   0x9   :  { %2208 = vmatprep.subr.bf16.mxu0 %v2592_v16  ;;  %2216 = vmatprep.subr.bf16.mxu1 %v2592_v16  ;;  %v2470_v17 = vld [vmem:[%s3014_s3 + $0x8] sm:$0xff]   ;;  %v2471_v18 = vld [vmem:[%s3014_s3 + $0x18] sm:$0xff]   ;;  %v65_v19 = vld [vmem:[%s3017_s6] sm:$0xff]  ;;  %vm846_vm10 = vcmask 64512  }
   0xa   :  { %2209 = vmatpush3.bf16.msra.mxu0 %v2468_v14  ;;  %2217 = vmatpush3.bf16.msra.mxu1 %v2469_v15  ;;  %v66_v20 = vld [vmem:[%s3017_s6 + $0x8] sm:$0xff]  ;;  %v2690_v29 = vshrl.u32 %v101_v26, 7  ;;  %v2698_v31 = vld [vmem:[%s3019_s8] sm:$0xff]  ;;  %v67_v46 = vld [vmem:[%s3017_s6 + $0x10] sm:$0xff] }
   0xb   :  { %2210 = vmatprep.subr.bf16.mxu0 %v2592_v16  ;;  %2218 = vmatprep.subr.bf16.mxu1 %v2592_v16  ;;  %v2687_v21 = vpack.c.bf16 %v66_v20, %v65_v19  ;;  %v2472_v43 = vld [vmem:[%s3014_s3 + $0x20] sm:$0xff]   ;;  %v2473_v45 = vld [vmem:[%s3014_s3 + $0x28] sm:$0xff]   ;;  %v68_v47 = vld [vmem:[%s3017_s6 + $0x18] sm:$0xff] }
   0xc   :  { %2212 = vmatprep.mubr.msk.bf16.mxu0 %vm2593_vm1, %v2592_v16  ;;  %2220 = vmatprep.mubr.msk.bf16.mxu1 %vm2593_vm1, %v2592_v16  ;;  %v2693_v30 = vsub.s32 0, %v2690_v29  ;;  %v109_v35 = vsub.s32 1, %v2690_v29  ;;  %v2727_v48 = vpack.c.bf16 %v68_v47, %v67_v46  ;;  %v116_v49 = vsub.s32 2, %v2690_v29 }
   0xd   :  { %v176_v50 = vsub.s32 3, %v2690_v29  ;;  %v233_v58 = vsub.s32 4, %v2690_v29  ;;  %v546_v47 = vsub.s32 5, %v2690_v29 }
   0xe   :  { %2211 = vmatpush3.bf16.msra.mxu0 %v2470_v17  ;;  %2219 = vmatpush3.bf16.msra.mxu1 %v2471_v18  ;;  %v104_v34 = vrot.slane %v2698_v31, %v2693_v30  ;;  %v110_v39 = vrot.slane %v2698_v31, %v109_v35  ;;  %v117_v51 = vrot.slane %v2698_v31, %v116_v49 }
   0xf   :  { %2224 = vmatprep.subr.bf16.mxu0 %v2592_v16  ;;  %2400 = vmatprep.subr.bf16.mxu1 %v2687_v21  ;;  %v177_v52 = vrot.slane %v2698_v31, %v176_v50 }
  0x90   :  { %v76_v4 = vpop.xlane.xlu0 %75 }
  0x91   :  { %v81_v5 = vmul.f32 0.03125, %v76_v4  ;;  %v234_v4 = vrot.slane %v2698_v31, %v233_v58 }
  0x93   :  { %v83_v6 = vsub.f32 %v34_v0, %v81_v5 }
  0x94   :  { %v79_v7 = vpop.xlane.xlu0 %78 }
  0x95   :  { %v82_v8 = vmul.f32 0.03125, %v79_v7  ;;  %v85_v9 = vmul.f32 %v83_v6, %v83_v6 }
  0x97   :  { %v84_v10 = vsub.f32 %v35_v1, %v82_v8  ;;  %v87_v11 = vsel %vm73_vm0, %v85_v9, 0.0 }
  0x98   :  { %88 = vadd.xlane.f32.xlu1 %v87_v11 }
  0x99   :  { %v86_v12 = vmul.f32 %v84_v10, %v84_v10 }
  0x9b   :  { %v90_v13 = vsel %vm73_vm0, %v86_v12, 0.0 }
  0x9c   :  { %91 = vadd.xlane.f32.xlu1 %v90_v13 }
 0x125   :  { %v89_v22 = vpop.xlane.xlu1 %88 }
 0x126   :  { %v93_v23 = vmul.f32 0.03125, %v89_v22 }
 0x128   :  { %v95_v24 = vadd.f32 1e-05, %v93_v23 }
 0x129   :  { %v92_v25 = vpop.xlane.xlu1 %91 }
 0x12a   :  { %2486 = vrsqrt.f32 %v95_v24  ;;  %v94_v27 = vmul.f32 0.03125, %v92_v25 }
 0x12c   :  { %v96_v28 = vadd.f32 1e-05, %v94_v27 }
 0x12e   :  { %2488 = vrsqrt.f32 %v96_v28 }
 0x134   :  { %v2487_v32 = vpop.eup %2486 }
 0x135   :  { %v99_v33 = vmul.f32 %v2487_v32, %v83_v6 }
 0x137   :  { %v105_v38 = vmul.f32 %v104_v34, %v99_v33 }
 0x138   :  { %v2489_v36 = vpop.eup %2488 }
 0x139   :  { %v100_v37 = vmul.f32 %v2489_v36, %v84_v10  ;;  %v111_v41 = vadd.f32 %v110_v39, %v105_v38 }
 0x13b   :  { %v106_v40 = vmul.f32 %v104_v34, %v100_v37 }
 0x13d   :  { %v112_v42 = vadd.f32 %v110_v39, %v106_v40 }
 0x13f   :  { %v113_v44 = vpack.c.bf16 %v112_v42, %v111_v41 }
 0x141   :  { %2213 = vmatmul.mubr.msk.bf16.vlgmr.msra.gmra.mrb[0].mxu0 %vm73_vm0, %v113_v44  ;;  %2221 = vmatmul.mubr.msk.bf16.vlgmr.msra.gmra.mrb[0].mxu1 %vm73_vm0, %v113_v44 }
 0x142   :  { %2225 = vmatpush3.bf16.msra.mxu0 %v2472_v43  ;;  %2228 = vmatprep.mubr.msk.bf16.mxu0 %vm2593_vm1, %v2592_v16 }
 0x143   :  { %2226 = vmatprep.subr.bf16.mxu0 %v2592_v16  ;;  %2402 = vmatpush3.bf16.msra.mxu1 %v2687_v21 }
 0x144   :  { %2404 = vmatprep.subr.bf16.mxu1 %v2727_v48 }
 0x146   :  { %2227 = vmatpush3.bf16.msra.mxu0 %v2473_v45 }
 0x147   :  { %2408 = vmatprep.subr.bf16.mxu0 %v2687_v21  ;;  %2406 = vmatpush3.bf16.msra.mxu1 %v2727_v48 }
 0x148   :  { %2416 = vmatprep.subr.bf16.mxu1 %v2687_v21 }
 0x149   :  { %2229 = vmatmul.mubr.msk.bf16.vlgmr.msra.gmra.mrb[4].mxu0 %vm73_vm0, %v113_v44 }
 0x14a   :  { %2410 = vmatpush3.bf16.msra.mxu0 %v2687_v21 }
 0x14b   :  { %2412 = vmatprep.subr.bf16.mxu0 %v2727_v48 }
 0x14e   :  { %2414 = vmatpush3.bf16.msra.mxu0 %v2727_v48 }
 0x214   :  { %v167_v53 = vpop.f32.mrb[0].mxu0  ;;  %v224_v54 = vpop.f32.mrb[0].mxu1 }
 0x215   :  { %v168_v55 = vadd.f32 %v167_v53, %v117_v51  ;;  %v2214_v56 = vpop.f32.mrb[1].mxu0  ;;  %v2222_v57 = vpop.f32.mrb[1].mxu1  ;;  %v225_v59 = vadd.f32 %v224_v54, %v177_v52  ;;  %v556_v53 = vsub.s32 6, %v2690_v29 }
 0x216   :  { %v170_v60 = vpop.f32.mrb[2].mxu0  ;;  %v227_v61 = vpop.f32.mrb[2].mxu1 }
 0x217   :  { %v288_v62 = vmul.f32 0.1, %v168_v55  ;;  %v171_v63 = vadd.f32 %v170_v60, %v117_v51  ;;  %v2215_v0 = vpop.f32.mrb[3].mxu0  ;;  %v2223_v1 = vpop.f32.mrb[3].mxu1  ;;  %v228_v3 = vadd.f32 %v227_v61, %v177_v52  ;;  %v290_v5 = vmul.f32 0.1, %v225_v59 }
 0x218   :  { %v2772_v55 = vrot.slane %v2698_v31, %v546_v47  ;;  %v2777_v59 = vrot.slane %v2698_v31, %v556_v53 }
 0x219   :  { %v289_v2 = vmul.f32 0.1, %v171_v63  ;;  %2240 = vmatprep.mubr.msk.f32.mxu1 %vm73_vm0, %v288_v62  ;;  %v291_v7 = vmul.f32 0.1, %v228_v3 }
 0x21b   :  { %2241 = vmatmul.mubr.msk.f32.vlgmr.msra.gmra.mrb[4].mxu1 %vm73_vm0, %v289_v2 }
 0x21c   :  { %v281_v6 = vpop.f32.mrb[4].mxu0  ;;  %2243 = vmatprep.mubr.msk.f32.mxu1 %vm73_vm0, %v290_v5  ;;  %2418 = vmatpush3.bf16.msra.mxu1 %v2687_v21 }
 0x21d   :  { %v282_v8 = vadd.f32 %v281_v6, %v234_v4  ;;  %v2230_v9 = vpop.f32.mrb[5].mxu0  ;;  %2420 = vmatprep.subr.bf16.mxu1 %v2727_v48 }
 0x21e   :  { %v284_v10 = vpop.f32.mrb[6].mxu0 }
 0x21f   :  { %v292_v11 = vmul.f32 0.1, %v282_v8  ;;  %v285_v12 = vadd.f32 %v284_v10, %v234_v4  ;;  %v2231_v13 = vpop.f32.mrb[7].mxu0  ;;  %2244 = vmatmul.mubr.msk.f32.gmra.mrb[6].mxu1 %vm73_vm0, %v291_v7 }
 0x220   :  { %2422 = vmatpush3.bf16.msra.mxu1 %v2727_v48 }
 0x221   :  { %v293_v14 = vmul.f32 0.1, %v285_v12  ;;  %2246 = vmatprep.mubr.msk.f32.mxu1 %vm73_vm0, %v292_v11 }
 0x223   :  { %2247 = vmatmul.mubr.msk.f32.gmra.mrb[8].mxu1 %vm73_vm0, %v293_v14 }
 0x2ee   :  { %v2242_v15 = vpop.f32.mrb[4].mxu1 }
 0x2ef   :  { %v408_v17 = vsub.f32 %v289_v2, %v2242_v15  ;;  %v378_v18 = vpop.f32.mrb[5].mxu1 }
 0x2f0   :  { %v407_v19 = vsub.f32 %v288_v62, %v378_v18 }
 0x2f1   :  { %v414_v23 = vmul.f32 %v408_v17, %v408_v17 }
 0x2f2   :  { %v413_v20 = vmul.f32 %v407_v19, %v407_v19  ;;  %v2245_v22 = vpop.f32.mrb[6].mxu1 }
 0x2f3   :  { %v410_v24 = vsub.f32 %v291_v7, %v2245_v22  ;;  %v388_v25 = vpop.f32.mrb[7].mxu1  ;;  %v37_v22 = vld [vmem:[%s3013_s2] sm:$0xff] }
 0x2f4   :  { %v409_v26 = vsub.f32 %v290_v5, %v388_v25  ;;  %2257 = vmatprep.mubr.msk.f32.mxu0 %vm73_vm0, %v413_v20  ;;  %v2475_v20 = vld [vmem:[%s3016_s5 + $0x8] sm:$0xff]  }
 0x2f5   :  { %2258 = vmatmul.mubr.msk.f32.vlgmr.msra.gmra.mrb[8].mxu0 %vm73_vm0, %v414_v23  ;;  %v416_v32 = vmul.f32 %v410_v24, %v410_v24  ;;  %v2594_v23 = vmov 0  }
 0x2f6   :  { %v415_v27 = vmul.f32 %v409_v26, %v409_v26  ;;  %v2248_v28 = vpop.f32.mrb[8].mxu1  ;;  %2467 = vset.pattern.permute.xlu0 %v2594_v23 }
 0x2f7   :  { %v2757_v33 = vsub.f32 %v293_v14, %v2248_v28  ;;  %v398_v34 = vpop.f32.mrb[9].mxu1  ;;  %804 = vperm.xlu0 %2467, %v37_v22  }
 0x2f8   :  { %v411_v36 = vsub.f32 %v292_v11, %v398_v34  ;;  %2260 = vmatprep.mubr.msk.f32.mxu0 %vm73_vm0, %v415_v27 }
 0x2f9   :  { %2261 = vmatmul.mubr.msk.f32.gmra.mrb[10].mxu0 %vm73_vm0, %v416_v32  ;;  %v418_v38 = vmul.f32 %v2757_v33, %v2757_v33 }
 0x2fa   :  { %v417_v37 = vmul.f32 %v411_v36, %v411_v36 }
 0x2fc   :  { %2263 = vmatprep.mubr.msk.f32.mxu0 %vm73_vm0, %v417_v37 }
 0x2fd   :  { %2264 = vmatmul.mubr.msk.f32.gmra.mrb[12].mxu0 %vm73_vm0, %v418_v38 }
 0x3c8   :  { %v2259_v39 = vpop.f32.mrb[8].mxu0 }
 0x3c9   :  { %v509_v40 = vadd.f32 1e-05, %v2259_v39  ;;  %v503_v41 = vpop.f32.mrb[9].mxu0 }
 0x3ca   :  { %v504_v42 = vadd.f32 1e-05, %v503_v41 }
 0x3cb   :  { %2490 = vrsqrt.f32 %v509_v40 }
 0x3cc   :  { %2492 = vrsqrt.f32 %v504_v42  ;;  %v2262_v43 = vpop.f32.mrb[10].mxu0 }
 0x3cd   :  { %v519_v44 = vadd.f32 1e-05, %v2262_v43  ;;  %v513_v45 = vpop.f32.mrb[11].mxu0 }
 0x3ce   :  { %v514_v46 = vadd.f32 1e-05, %v513_v45 }
 0x3cf   :  { %2494 = vrsqrt.f32 %v519_v44 }
 0x3d0   :  { %2496 = vrsqrt.f32 %v514_v46  ;;  %v2766_v51 = vpop.f32.mrb[12].mxu0 }
 0x3d1   :  { %v523_v52 = vpop.f32.mrb[13].mxu0 }
 0x3d2   :  { %v524_v54 = vadd.f32 1e-05, %v523_v52 }
 0x3d4   :  { %2498 = vrsqrt.f32 %v524_v54 }
 0x3d5   :  { %v2491_v56 = vpop.eup %2490 }
 0x3d6   :  { %v2493_v57 = vpop.eup %2492  ;;  %v539_v60 = vmul.f32 %v2491_v56, %v408_v17 }
 0x3d7   :  { %v538_v61 = vmul.f32 %v2493_v57, %v407_v19  ;;  %v2474_v19 = vld [vmem:[%s3016_s5] sm:$0xff]  }
 0x3d8   :  { %v549_v62 = vmul.f32 %v2772_v55, %v539_v60  ;;  %2280 = vmatprep.subr.bf16.mxu0 %v2474_v19 }
 0x3d9   :  { %v2495_v63 = vpop.eup %2494  ;;  %v548_v0 = vmul.f32 %v2772_v55, %v538_v61  ;;  %2281 = vmatpush3.bf16.msra.mxu0 %v2474_v19 }
 0x3da   :  { %v2497_v1 = vpop.eup %2496  ;;  %v2782_v2 = vadd.f32 %v2777_v59, %v549_v62  ;;  %v541_v3 = vmul.f32 %v2495_v63, %v410_v24  ;;  %2282 = vmatprep.subr.bf16.mxu0 %v2475_v20  ;;  %v38_v24 = vld [vmem:[%s3013_s2 + $0x8] sm:$0xff] }
 0x3db   :  { %v540_v4 = vmul.f32 %v2497_v1, %v409_v26  ;;  %v2785_v5 = vadd.f32 %v2777_v59, %v548_v0  ;;  %809 = vperm.xlu0 %2467, %v38_v24  }
 0x3dc   :  { %v551_v6 = vmul.f32 %v2772_v55, %v541_v3  ;;  %v565_v10 = vmul.f32 %v2782_v2, %v2782_v2 }
 0x3dd   :  { %v564_v7 = vmul.f32 %v2785_v5, %v2785_v5  ;;  %v550_v8 = vmul.f32 %v2772_v55, %v540_v4  ;;  %2283 = vmatpush3.bf16.msra.mxu0 %v2475_v20 }
 0x3de   :  { %v2499_v9 = vpop.eup %2498  ;;  %v2794_v11 = vadd.f32 %v2777_v59, %v551_v6 }
 0x3df   :  { %2274 = vmatprep.mubr.msk.f32.mxu1 %vm73_vm0, %v564_v7  ;;  %v2798_v12 = vadd.f32 %v2777_v59, %v550_v8  ;;  %v542_v13 = vmul.f32 %v2499_v9, %v411_v36 }
 0x3e0   :  { %2275 = vmatmul.mubr.msk.f32.vlgmr.msra.gmra.mrb[10].mxu1 %vm73_vm0, %v565_v10  ;;  %v567_v17 = vmul.f32 %v2794_v11, %v2794_v11 }
 0x3e1   :  { %v566_v14 = vmul.f32 %v2798_v12, %v2798_v12  ;;  %v552_v15 = vmul.f32 %v2772_v55, %v542_v13 }
 0x3e3   :  { %2277 = vmatprep.mubr.msk.f32.mxu1 %vm73_vm0, %v566_v14  ;;  %v562_v18 = vadd.f32 %v2777_v59, %v552_v15 }
 0x3e4   :  { %2278 = vmatmul.mubr.msk.f32.gmra.mrb[12].mxu1 %vm73_vm0, %v567_v17 }
 0x3e5   :  { %2288 = vmatprep.subr.mxu1 %v562_v18 }
 0x3e6   :  { %2289 = vmatpush3.msra.mxu1 %v562_v18 }
 0x4b3   :  { %v2276_v25 = vpop.f32.mrb[10].mxu1 }
 0x4b4   :  { %v666_v26 = vmul.f32 8.0, %v2276_v25  ;;  %v646_v27 = vpop.f32.mrb[11].mxu1 }
 0x4b5   :  { %v665_v28 = vmul.f32 8.0, %v646_v27 }
 0x4b6   :  { %2500 = vrsqrt.f32 %v666_v26  ;;  %vm678_vm2 = vcmp.eq.f32.partialorder %v666_v26, inf  ;;  %v681_v41 = vand.u32 2147483648, %v666_v26  ;;  %vm680_vm3 = vcmp.eq.f32.partialorder %v666_v26, 0.0 }
 0x4b7   :  { %2502 = vrsqrt.f32 %v665_v28  ;;  %v2279_v32 = vpop.f32.mrb[12].mxu1  ;;  %vm671_vm4 = vcmp.eq.f32.partialorder %v665_v28, inf  ;;  %v674_v44 = vand.u32 2147483648, %v665_v28  ;;  %vm673_vm5 = vcmp.eq.f32.partialorder %v665_v28, 0.0 }
 0x4b8   :  { %v668_v34 = vmul.f32 8.0, %v2279_v32  ;;  %v656_v36 = vpop.f32.mrb[13].mxu1 }
 0x4b9   :  { %v667_v37 = vmul.f32 8.0, %v656_v36 }
 0x4ba   :  { %2504 = vrsqrt.f32 %v668_v34  ;;  %vm692_vm6 = vcmp.eq.f32.partialorder %v668_v34, inf  ;;  %vm694_vm7 = vcmp.eq.f32.partialorder %v668_v34, 0.0  ;;  %v695_v61 = vand.u32 2147483648, %v668_v34 }
 0x4bb   :  { %2506 = vrsqrt.f32 %v667_v37  ;;  %vm685_vm8 = vcmp.eq.f32.partialorder %v667_v37, inf  ;;  %v688_v1 = vand.u32 2147483648, %v667_v37  ;;  %vm687_vm9 = vcmp.eq.f32.partialorder %v667_v37, 0.0 }
 0x4c0   :  { %v2501_v38 = vpop.eup %2500 }
 0x4c1   :  { %v2503_v39 = vpop.eup %2502  ;;  %v677_v40 = vmul.f32 %v2501_v38, %v666_v26 }
 0x4c2   :  { %v670_v42 = vmul.f32 %v2503_v39, %v665_v28 }
 0x4c3   :  { %v679_v43 = vsel %vm678_vm2, %v666_v26, %v677_v40 }
 0x4c4   :  { %v2505_v45 = vpop.eup %2504  ;;  %v682_v46 = vsel %vm680_vm3, %v681_v41, %v679_v43  ;;  %v672_v52 = vsel %vm671_vm4, %v665_v28, %v670_v42 }
 0x4c5   :  { %v2507_v54 = vpop.eup %2506  ;;  %v675_v56 = vsel %vm673_vm5, %v674_v44, %v672_v52  ;;  %v691_v57 = vmul.f32 %v2505_v45, %v668_v34  ;;  %v698_v60 = vmax.f32 %v682_v46, 1e-12 }
 0x4c6   :  { %v684_v62 = vmul.f32 %v2507_v54, %v667_v37  ;;  %v697_v63 = vmax.f32 %v675_v56, 1e-12  ;;  %v2595_v56 = vmov 0.0|0.0  }
 0x4c7   :  { %v693_v0 = vsel %vm692_vm6, %v668_v34, %v691_v57  ;;  %2508 = vrcp.f32 %v698_v60  ;;  %2423 = vmatprep.subr.bf16.mxu1 %v2595_v56  ;;  %2429 = vmatprep.subr.bf16.mxu0 %v2595_v56  ;;  %v529_v57 = vadd.f32 1e-05, %v2766_v51  ;;  %v70_v60 = vld [vmem:[%s3018_s7 + $0x8] sm:$0xff] }
 0x4c8   :  { %v696_v3 = vsel %vm694_vm7, %v695_v61, %v693_v0  ;;  %v686_v4 = vsel %vm685_vm8, %v667_v37, %v684_v62  ;;  %2510 = vrcp.f32 %v697_v63  ;;  %v69_v63 = vld [vmem:[%s3018_s7] sm:$0xff] }
 0x4c9   :  { %v700_v6 = vmax.f32 %v696_v3, 1e-12  ;;  %v689_v7 = vsel %vm687_vm9, %v688_v1, %v686_v4 }
 0x4ca   :  { %v699_v8 = vmax.f32 %v689_v7, 1e-12 }
 0x4cb   :  { %2512 = vrcp.f32 %v700_v6 }
 0x4cc   :  { %2514 = vrcp.f32 %v699_v8 }
 0x4d1   :  { %v2509_v9 = vpop.eup %2508 }
 0x4d2   :  { %v2511_v10 = vpop.eup %2510  ;;  %v704_v13 = vmul.f32 %v2509_v9, %v2782_v2 }
 0x4d3   :  { %v702_v14 = vmul.f32 %v2511_v10, %v2785_v5 }
 0x4d5   :  { %v2513_v15 = vpop.eup %2512  ;;  %v709_v17 = vpack.c.bf16 %v704_v13, %v702_v14  ;;  %v72_v13 = vld [vmem:[%s3018_s7 + $0x18] sm:$0xff] }
 0x4d6   :  { %v2515_v18 = vpop.eup %2514  ;;  %v708_v19 = vmul.f32 %v2513_v15, %v2794_v11 }
 0x4d7   :  { %2284 = vmatprep.mubr.msk.bf16.mxu0 %vm73_vm0, %v709_v17  ;;  %v706_v20 = vmul.f32 %v2515_v18, %v2798_v12  ;;  %v805_v12 = vpop.permute.xlu0 %804  ;;  %v71_v17 = vld [vmem:[%s3018_s7 + $0x10] sm:$0xff] }
 0x4d9   :  { %v710_v22 = vpack.c.bf16 %v708_v19, %v706_v20 }
 0x4db   :  { %2285 = vmatmul.mubr.msk.bf16.vlgmr.msra.gmra.mrb[16].mxu0 %vm73_vm0, %v710_v22  ;;  %v810_v42 = vpop.permute.xlu0 %809 }
 0x4dc   :  { %2323 = vmatprep.mubr.msk.f32.mxu0 %vm2593_vm1, %v2592_v16 }
 0x5ae   :  { %v2286_v23 = vpop.f32.mrb[16].mxu0 }
 0x5af   :  { %v2081_v24 = vclamps-f32 %v2286_v23, 15.0  ;;  %v767_v2 = vpop.f32.mrb[17].mxu0 }
 0x5b0   :  { %v2079_v25 = vclamps-f32 %v767_v2, 15.0  ;;  %v2287_v5 = vpop.f32.mrb[18].mxu0 }
 0x5b1   :  { %v794_v26 = vmul.f32 1.442695, %v2081_v24  ;;  %v2082_v27 = vclamps-f32 %v2287_v5, 15.0  ;;  %v770_v28 = vpop.f32.mrb[19].mxu0 }
 0x5b2   :  { %v790_v32 = vmul.f32 1.442695, %v2079_v25  ;;  %v2080_v6 = vclamps-f32 %v770_v28, 15.0  ;;  %v2435_v25 = vpack.c.bf16 %v70_v60, %v69_v63 }
 0x5b3   :  { %2516 = vpow2.f32 %v794_v26  ;;  %v796_v11 = vmul.f32 1.442695, %v2082_v27  ;;  %v2439_v26 = vpack.c.bf16 %v72_v13, %v71_v17 }
 0x5b4   :  { %2518 = vpow2.f32 %v790_v32  ;;  %v792_v10 = vmul.f32 1.442695, %v2080_v6 }
 0x5b5   :  { %2520 = vpow2.f32 %v796_v11 }
 0x5b6   :  { %2522 = vrsqrt.f32 %v529_v57 }
 0x5b7   :  { %2524 = vpow2.f32 %v792_v10 }
 0x5bd   :  { %v2517_v34 = vpop.eup %2516 }
 0x5be   :  { %v2519_v36 = vpop.eup %2518  ;;  %v800_v37 = vmul.f32 0.1, %v2517_v34 }
 0x5bf   :  { %v2521_v38 = vpop.eup %2520  ;;  %v798_v39 = vmul.f32 0.1, %v2519_v36 }
 0x5c0   :  { %v812_v40 = vmul.f32 %v805_v12, %v800_v37  ;;  %v801_v41 = vmul.f32 0.1, %v2521_v38  ;;  %v2523_v4 = vpop.eup %2522 }
 0x5c1   :  { %v543_v51 = vmul.f32 %v2523_v4, %v2757_v33  ;;  %v2525_v27 = vpop.eup %2524 }
 0x5c2   :  { %v2829_v43 = vmul.f32 %v812_v40, %v798_v39  ;;  %v2831_v44 = vmul.f32 %v810_v42, %v801_v41  ;;  %814 = vxpose.xlu1.b32.start.end [1/1] (short) (narrow) %v812_v40, 32  ;;  %v799_v32 = vmul.f32 0.1, %v2525_v27 }
 0x5c3   :  { %v553_v22 = vmul.f32 %v2772_v55, %v543_v51 }
 0x5c4   :  { %1026 = vxpose.xlu0.b32.start.end [1/1] (short) (narrow) %v2831_v44, 32  ;;  %v1238_v11 = vmul.f32 %v2831_v44, %v799_v32 }
 0x5c5   :  { %v563_v2 = vadd.f32 %v2777_v59, %v553_v22 }
 0x642   :  { %v830_v45 = vpop.trf.xlu1 }
 0x643   :  { %2290 = vmatprep.mubr.msk.f32.mxu1 %vm846_vm10, %v830_v45 }
 0x644   :  { %v1042_v9 = vpop.trf.xlu0 }
 0x646   :  { %v831_v46 = vpop.trf.xlu1 }
 0x647   :  { %2291 = vmatmul.mubr.msk.f32.vlgmr.msra.gmra.mrb[14].mxu1 %vm846_vm10, %v831_v46 }
 0x648   :  { %v1043_v23 = vpop.trf.xlu0 }
 0x64a   :  { %v832_v52 = vpop.trf.xlu1 }
 0x64b   :  { %2293 = vmatprep.mubr.msk.f32.mxu1 %vm846_vm10, %v832_v52 }
 0x64c   :  { %v1044_v5 = vpop.trf.xlu0 }
 0x64e   :  { %v833_v54 = vpop.trf.xlu1 }
 0x64f   :  { %2294 = vmatmul.mubr.msk.f32.gmra.mrb[16].mxu1 %vm846_vm10, %v833_v54 }
 0x650   :  { %2304 = vmatprep.mubr.msk.f32.mxu1 %vm2593_vm1, %v2592_v16  ;;  %v1045_v28 = vpop.trf.xlu0 }
 0x71a   :  { %v2292_v61 = vpop.f32.mrb[14].mxu1 }
 0x71b   :  { %v945_v62 = vmul.f32 0.1, %v2292_v61  ;;  %v925_v0 = vpop.f32.mrb[15].mxu1 }
 0x71c   :  { %v944_v1 = vmul.f32 0.1, %v925_v0 }
 0x71d   :  { %v949_v3 = vmul.f32 %v945_v62, %v70_v60 }
 0x71e   :  { %v948_v7 = vmul.f32 %v944_v1, %v69_v63 }
 0x720   :  { %v2424_v8 = vpack.c.bf16 %v949_v3, %v948_v7 }
 0x722   :  { %v2295_v14 = vpop.f32.mrb[16].mxu1  ;;  %2425 = vmatpush3.bf16.msra.mxu1 %v2424_v8 }
 0x723   :  { %v947_v15 = vmul.f32 0.1, %v2295_v14  ;;  %v935_v18 = vpop.f32.mrb[17].mxu1  ;;  %2426 = vmatprep.subr.bf16.mxu1 %v2595_v56  ;;  %v2476_v14 = vld [vmem:[%s3014_s3 + $0x30] sm:$0xff]  }
 0x724   :  { %v946_v19 = vmul.f32 0.1, %v935_v18 }
 0x725   :  { %v951_v20 = vmul.f32 %v947_v15, %v72_v13  ;;  %v2477_v15 = vld [vmem:[%s3014_s3 + $0x38] sm:$0xff]  }
 0x726   :  { %v950_v33 = vmul.f32 %v946_v19, %v71_v17 }
 0x728   :  { %v2427_v24 = vpack.c.bf16 %v951_v20, %v950_v33 }
 0x72a   :  { %2428 = vmatpush3.bf16.msra.mxu1 %v2427_v24 }
 0x72b   :  { %2307 = vmatprep.subr.mxu1 %v563_v2 }
 0x72d   :  { %2305 = vmatmul.mubr.msk.f32.vlgmr.msra.gmra.mrb[18].mxu1 %vm73_vm0, %v798_v39 }
 0x72e   :  { %2308 = vmatpush3.msra.mxu1 %v563_v2  ;;  %2309 = vmatprep.mubr.msk.f32.mxu1 %vm846_vm10, %v1042_v9 }
 0x72f   :  { %2436 = vmatprep.subr.bf16.mxu1 %v2435_v25 }
 0x731   :  { %2310 = vmatmul.mubr.msk.f32.vlgmr.msra.gmra.mrb[20].mxu1 %vm846_vm10, %v1043_v23 }
 0x732   :  { %2312 = vmatprep.mubr.msk.f32.mxu1 %vm846_vm10, %v1044_v5  ;;  %2438 = vmatpush3.bf16.msra.mxu1 %v2435_v25 }
 0x733   :  { %2440 = vmatprep.subr.bf16.mxu1 %v2439_v26 }
 0x735   :  { %2313 = vmatmul.mubr.msk.f32.gmra.mrb[22].mxu1 %vm846_vm10, %v1045_v28  ;;  %v2478_v28 = vld [vmem:[%s3014_s3 + $0x40] sm:$0xff]  }
 0x736   :  { %2442 = vmatpush3.bf16.msra.mxu1 %v2439_v26  ;;  %2334 = vmatprep.mubr.msk.f32.mxu1 %vm73_vm0, %v2829_v43 }
 0x737   :  { %2452 = vmatprep.subr.bf16.mxu1 %v2687_v21 }
 0x739   :  { %2335 = vmatmul.mubr.msk.f32.vlgmr.msra.gmra.mrb[24].mxu1 %vm73_vm0, %v1238_v11 }
 0x73a   :  { %2454 = vmatpush3.bf16.msra.mxu1 %v2687_v21 }
 0x73b   :  { %2456 = vmatprep.subr.bf16.mxu1 %v2727_v48 }
 0x73e   :  { %2458 = vmatpush3.bf16.msra.mxu1 %v2727_v48 }
 0x73f   :  { %2367 = vmatprep.subr.bf16.mxu1 %v2592_v16 }
 0x800   :  { %v1021_v12 = vpop.f32.mrb[18].mxu1 }
 0x801   :  { %v2306_v34 = vpop.f32.mrb[19].mxu1 }
 0x804   :  { %v2311_v36 = vpop.f32.mrb[20].mxu1 }
 0x805   :  { %v1156_v37 = vmul.f32 0.1, %v2311_v36  ;;  %v1136_v38 = vpop.f32.mrb[21].mxu1 }
 0x806   :  { %v1155_v39 = vmul.f32 0.1, %v1136_v38 }
 0x807   :  { %v1160_v40 = vmul.f32 %v1156_v37, %v70_v60  ;;  %v1025_v60 = vmul.f32 0.1, %v1021_v12 }
 0x808   :  { %v1159_v41 = vmul.f32 %v1155_v39, %v69_v63  ;;  %v2314_v42 = vpop.f32.mrb[22].mxu1 }
 0x809   :  { %v1158_v43 = vmul.f32 0.1, %v2314_v42  ;;  %v1146_v44 = vpop.f32.mrb[23].mxu1 }
 0x80a   :  { %v2430_v45 = vpack.c.bf16 %v1160_v40, %v1159_v41  ;;  %v1157_v46 = vmul.f32 0.1, %v1146_v44 }
 0x80b   :  { %v1162_v52 = vmul.f32 %v1158_v43, %v72_v13 }
 0x80c   :  { %v1161_v54 = vmul.f32 %v1157_v46, %v71_v17  ;;  %2431 = vmatpush3.bf16.msra.mxu0 %v2430_v45  ;;  %v2336_v57 = vpop.f32.mrb[24].mxu1 }
 0x80d   :  { %v1311_v61 = vpop.f32.mrb[25].mxu1  ;;  %2432 = vmatprep.subr.bf16.mxu0 %v2595_v56  ;;  %v1321_v56 = vmax.f32 %v2336_v57, 1e-06 }
 0x80e   :  { %v2433_v62 = vpack.c.bf16 %v1162_v52, %v1161_v54  ;;  %v1320_v0 = vmax.f32 %v1311_v61, 1e-06 }
 0x810   :  { %2526 = vrcp.f32 %v1320_v0  ;;  %2434 = vmatpush3.bf16.msra.mxu0 %v2433_v62 }
 0x811   :  { %2444 = vmatprep.subr.bf16.mxu0 %v2687_v21  ;;  %2528 = vrcp.f32 %v1321_v56 }
 0x813   :  { %2324 = vmatmul.mubr.msk.f32.vlgmr.msra.gmra.mrb[14].mxu0 %vm73_vm0, %v799_v32  ;;  %v2479_v32 = vld [vmem:[%s3014_s3 + $0x48] sm:$0xff]  }
 0x814   :  { %2446 = vmatpush3.bf16.msra.mxu0 %v2687_v21 }
 0x815   :  { %2448 = vmatprep.subr.bf16.mxu0 %v2727_v48 }
 0x818   :  { %2450 = vmatpush3.bf16.msra.mxu0 %v2727_v48 }
 0x819   :  { %2359 = vmatprep.subr.bf16.mxu0 %v2592_v16 }
 0x81a   :  { %v2527_v63 = vpop.eup %2526 }
 0x81b   :  { %v1323_v1 = vmul.f32 %v2527_v63, %v1025_v60  ;;  %v2529_v7 = vpop.eup %2528 }
 0x81d   :  { %2345 = vmatprep.mubr.msk.f32.mxu0 %vm73_vm0, %v1323_v1 }
 0x8e6   :  { %v1232_v3 = vpop.f32.mrb[14].mxu0 }
 0x8e7   :  { %v1236_v4 = vmul.f32 0.1, %v1232_v3  ;;  %v2325_v6 = vpop.f32.mrb[15].mxu0  ;;  %v2921_v3 = vld [vmem:[%s3019_s8 + $0x8] sm:$0xff] }
 0x8e9   :  { %v1325_v8 = vmul.f32 %v2529_v7, %v1236_v4  ;;  %v1583_v4 = vrot.slane %v2921_v3, %v2693_v30 }
 0x8eb   :  { %2346 = vmatmul.mubr.msk.f32.vlgmr.msra.gmra.mrb[20].mxu0 %vm73_vm0, %v1325_v8 }
 0x8ec   :  { %2363 = vmatprep.mubr.msk.bf16.mxu0 %vm2593_vm1, %v2592_v16  ;;  %2360 = vmatpush3.bf16.msra.mxu0 %v2476_v14 }
 0x8ed   :  { %2361 = vmatprep.subr.bf16.mxu0 %v2592_v16 }
 0x8f0   :  { %2362 = vmatpush3.bf16.msra.mxu0 %v2477_v15 }
 0x8f1   :  { %2375 = vmatprep.subr.bf16.mxu0 %v2592_v16 }
 0x9be   :  { %v2347_v21 = vpop.f32.mrb[20].mxu0 }
 0x9bf   :  { %v1408_v48 = vsub.f32 %v1325_v8, %v2347_v21  ;;  %v1398_v9 = vpop.f32.mrb[21].mxu0 }
 0x9c0   :  { %v1407_v51 = vsub.f32 %v1323_v1, %v1398_v9 }
 0x9c1   :  { %v1410_v13 = vmul.f32 %v1408_v48, %v1408_v48 }
 0x9c2   :  { %v1409_v10 = vmul.f32 %v1407_v51, %v1407_v51 }
 0x9c4   :  { %2356 = vmatprep.mubr.msk.f32.mxu1 %vm73_vm0, %v1409_v10 }
 0x9c5   :  { %2357 = vmatmul.mubr.msk.f32.vlgmr.msra.gmra.mrb[26].mxu1 %vm73_vm0, %v1410_v13 }
 0x9c6   :  { %2371 = vmatprep.mubr.msk.bf16.mxu1 %vm2593_vm1, %v2592_v16  ;;  %2368 = vmatpush3.bf16.msra.mxu1 %v2478_v28  ;;  %v1669_v28 = vrot.slane %v2921_v3, %v109_v35  ;;  %v2480_v35 = vld [vmem:[%s3015_s4] sm:$0xff]  }
 0x9c7   :  { %2369 = vmatprep.subr.bf16.mxu1 %v2592_v16 }
 0x9ca   :  { %2370 = vmatpush3.bf16.msra.mxu1 %v2479_v32 }
 0x9cb   :  { %2383 = vmatprep.subr.bf16.mxu1 %v2592_v16 }
 0xa98   :  { %v2358_v17 = vpop.f32.mrb[26].mxu1 }
 0xa99   :  { %v1489_v18 = vadd.f32 1e-05, %v2358_v17  ;;  %v1483_v19 = vpop.f32.mrb[27].mxu1 }
 0xa9a   :  { %v1484_v20 = vadd.f32 1e-05, %v1483_v19 }
 0xa9b   :  { %2530 = vrsqrt.f32 %v1489_v18 }
 0xa9c   :  { %2532 = vrsqrt.f32 %v1484_v20 }
 0xaa5   :  { %v2531_v22 = vpop.eup %2530 }
 0xaa6   :  { %v2533_v33 = vpop.eup %2532  ;;  %v1495_v23 = vmul.f32 %v2531_v22, %v1408_v48 }
 0xaa7   :  { %v1494_v24 = vmul.f32 %v2533_v33, %v1407_v51 }
 0xaa8   :  { %v1497_v2 = vmul.f32 %v1495_v23, %v2772_v55 }
 0xaa9   :  { %v1496_v25 = vmul.f32 %v1494_v24, %v2772_v55  ;;  %v1503_v55 = vsub.s32 7, %v2690_v29 }
 0xaaa   :  { %v1499_v5 = vadd.f32 %v1497_v2, %v2777_v59 }
 0xaab   :  { %v1498_v26 = vadd.f32 %v1496_v25, %v2777_v59  ;;  %v1504_v59 = vrot.slane %v2698_v31, %v1503_v55 }
 0xaad   :  { %v1500_v27 = vpack.c.bf16 %v1499_v5, %v1498_v26 }
 0xaaf   :  { %2364 = vmatmul.mubr.msk.bf16.vlgmr.msra.gmra.mrb[24].mxu0 %vm73_vm0, %v1500_v27 }
 0xab0   :  { %2379 = vmatprep.mubr.msk.bf16.mxu0 %vm2593_vm1, %v2592_v16  ;;  %2376 = vmatpush3.bf16.msra.mxu0 %v2480_v35 }
 0xab1   :  { %2377 = vmatprep.subr.bf16.mxu0 %v2592_v16 }
 0xb82   :  { %v1554_v11 = vpop.f32.mrb[24].mxu0 }
 0xb83   :  { %v1555_v12 = vadd.f32 %v1554_v11, %v1504_v59  ;;  %v2365_v34 = vpop.f32.mrb[25].mxu0  ;;  %v1675_v11 = vrot.slane %v2921_v3, %v116_v49  ;;  %v2482_v49 = vld [vmem:[%s3015_s4 + $0x10] sm:$0xff]  }
 0xb84   :  { %v1557_v36 = vpop.f32.mrb[26].mxu0 }
 0xb85   :  { %v1563_v37 = vmul.f32 0.044715, %v1555_v12  ;;  %v1558_v38 = vadd.f32 %v1557_v36, %v1504_v59  ;;  %v2366_v39 = vpop.f32.mrb[27].mxu0  ;;  %v1561_v62 = vmul.f32 0.5, %v1555_v12 }
 0xb87   :  { %v1565_v40 = vmul.f32 %v1563_v37, %v1555_v12  ;;  %v1564_v41 = vmul.f32 0.044715, %v1558_v38  ;;  %v1562_v0 = vmul.f32 0.5, %v1558_v38 }
 0xb89   :  { %v1567_v42 = vmul.f32 %v1565_v40, %v1555_v12  ;;  %v1566_v43 = vmul.f32 %v1564_v41, %v1558_v38 }
 0xb8b   :  { %v1569_v44 = vadd.f32 %v1567_v42, %v1555_v12  ;;  %v1568_v45 = vmul.f32 %v1566_v43, %v1558_v38 }
 0xb8d   :  { %v1571_v46 = vmul.f32 0.7978846, %v1569_v44  ;;  %v1570_v52 = vadd.f32 %v1568_v45, %v1558_v38  ;;  %v36_v44 = vld [vmem:[%s3012_s1] sm:$0x3]  ;;  %v2481_v45 = vld [vmem:[%s3015_s4 + $0x8] sm:$0xff]  }
 0xb8e   :  { %2378 = vmatpush3.bf16.msra.mxu0 %v2481_v45 }
 0xb8f   :  { %2534 = vtanh.f32 %v1571_v46  ;;  %v1572_v54 = vmul.f32 0.7978846, %v1570_v52  ;;  %v1708_v46 = vsub.f32 0.0, %v36_v44  ;;  %v2483_v52 = vld [vmem:[%s3015_s4 + $0x18] sm:$0xff]   ;;  %2391 = vmatprep.subr.bf16.mxu0 %v2592_v16 }
 0xb91   :  { %2536 = vtanh.f32 %v1572_v54  ;;  %v1709_v54 = vmul.f32 1.442695, %v1708_v46 }
 0xb99   :  { %v2535_v57 = vpop.eup %2534 }
 0xb9a   :  { %v1575_v31 = vadd.f32 1.0, %v2535_v57 }
 0xb9b   :  { %v2537_v61 = vpop.eup %2536 }
 0xb9c   :  { %v1576_v60 = vadd.f32 1.0, %v2537_v61  ;;  %v1577_v63 = vmul.f32 %v1575_v31, %v1561_v62 }
 0xb9e   :  { %v1578_v1 = vmul.f32 %v1576_v60, %v1562_v0 }
 0xba0   :  { %v1579_v56 = vpack.c.bf16 %v1578_v1, %v1577_v63 }
 0xba2   :  { %2372 = vmatmul.mubr.msk.bf16.vlgmr.msra.gmra.mrb[28].mxu1 %vm73_vm0, %v1579_v56 }
 0xba3   :  { %2387 = vmatprep.mubr.msk.bf16.mxu1 %vm2593_vm1, %v2592_v16  ;;  %2384 = vmatpush3.bf16.msra.mxu1 %v2482_v49  ;;  %v1723_v49 = vrot.slane %v2921_v3, %v546_v47 }
 0xba4   :  { %2385 = vmatprep.subr.bf16.mxu1 %v2592_v16 }
 0xba7   :  { %2386 = vmatpush3.bf16.msra.mxu1 %v2483_v52 }
 0xc75   :  { %v1633_v6 = vpop.f32.mrb[28].mxu1 }
 0xc76   :  { %v1634_v7 = vadd.f32 %v1633_v6, %v1583_v4  ;;  %v2373_v8 = vpop.f32.mrb[29].mxu1 }
 0xc77   :  { %v1636_v21 = vpop.f32.mrb[30].mxu1 }
 0xc78   :  { %v1637_v48 = vadd.f32 %v1636_v21, %v1583_v4  ;;  %v2374_v9 = vpop.f32.mrb[31].mxu1  ;;  %v1640_v51 = vsel %vm73_vm0, %v1634_v7, 0.0 }
 0xc79   :  { %1641 = vadd.xlane.f32.xlu1 %v1640_v51 }
 0xc7a   :  { %v1643_v10 = vsel %vm73_vm0, %v1637_v48, 0.0 }
 0xc7b   :  { %1644 = vadd.xlane.f32.xlu0 %v1643_v10 }
 0xd06   :  { %v1642_v13 = vpop.xlane.xlu1 %1641 }
 0xd07   :  { %v1646_v14 = vmul.f32 0.03125, %v1642_v13 }
 0xd08   :  { %v1645_v15 = vpop.xlane.xlu0 %1644 }
 0xd09   :  { %v1648_v17 = vsub.f32 %v1634_v7, %v1646_v14  ;;  %v1647_v18 = vmul.f32 0.03125, %v1645_v15 }
 0xd0b   :  { %v1649_v19 = vsub.f32 %v1637_v48, %v1647_v18  ;;  %v1650_v20 = vmul.f32 %v1648_v17, %v1648_v17 }
 0xd0d   :  { %v1652_v22 = vsel %vm73_vm0, %v1650_v20, 0.0  ;;  %v1651_v33 = vmul.f32 %v1649_v19, %v1649_v19 }
 0xd0e   :  { %1653 = vadd.xlane.f32.xlu1 %v1652_v22 }
 0xd0f   :  { %v1655_v23 = vsel %vm73_vm0, %v1651_v33, 0.0 }
 0xd12   :  { %1656 = vadd.xlane.f32.xlu1 %v1655_v23 }
 0xd9b   :  { %v1654_v24 = vpop.xlane.xlu1 %1653 }
 0xd9c   :  { %v1658_v2 = vmul.f32 0.03125, %v1654_v24 }
 0xd9e   :  { %v1660_v25 = vadd.f32 1e-05, %v1658_v2 }
 0xd9f   :  { %v1657_v5 = vpop.xlane.xlu1 %1656 }
 0xda0   :  { %2538 = vrsqrt.f32 %v1660_v25  ;;  %v1659_v26 = vmul.f32 0.03125, %v1657_v5 }
 0xda2   :  { %v1661_v27 = vadd.f32 1e-05, %v1659_v26 }
 0xda4   :  { %2540 = vrsqrt.f32 %v1661_v27 }
 0xda5   :  { %2542 = vpow2.f32 %v1709_v54 }
 0xdaa   :  { %v2539_v32 = vpop.eup %2538 }
 0xdab   :  { %v1664_v59 = vmul.f32 %v2539_v32, %v1648_v17 }
 0xdad   :  { %v1670_v12 = vmul.f32 %v1669_v28, %v1664_v59 }
 0xdae   :  { %v2541_v34 = vpop.eup %2540 }
 0xdaf   :  { %v1676_v36 = vadd.f32 %v1675_v11, %v1670_v12  ;;  %v1665_v37 = vmul.f32 %v2541_v34, %v1649_v19  ;;  %v2543_v57 = vpop.eup %2542 }
 0xdb0   :  { %v1711_v31 = vadd.f32 1.0, %v2543_v57 }
 0xdb1   :  { %v1678_v38 = vmul.f32 %v1676_v36, %v1676_v36  ;;  %v1671_v39 = vmul.f32 %v1669_v28, %v1665_v37 }
 0xdb2   :  { %2544 = vrcp.f32 %v1711_v31 }
 0xdb3   :  { %v1680_v40 = vsel %vm73_vm0, %v1678_v38, 0.0  ;;  %v1677_v41 = vadd.f32 %v1675_v11, %v1671_v39 }
 0xdb4   :  { %1681 = vadd.xlane.f32.xlu1 %v1680_v40 }
 0xdb5   :  { %v1679_v42 = vmul.f32 %v1677_v41, %v1677_v41 }
 0xdb7   :  { %v1683_v43 = vsel %vm73_vm0, %v1679_v42, 0.0  ;;  %v2485_v42 = vld [vmem:[%s3014_s3 + $0x58] sm:$0xff]  }
 0xdb8   :  { %1684 = vadd.xlane.f32.xlu1 %v1683_v43  ;;  %v2596_v43 = vmov 1966171168  }
 0xdb9   :  { %v1879_v35 = vunpack.c.l.s4 %v2596_v43 }
 0xdbc   :  { %v2545_v61 = vpop.eup %2544 }
 0xdbd   :  { %v1714_v62 = vmul.f32 %v2545_v61, %v36_v44  ;;  %v1880_v44 = vunpack.c.0.s8 %v1879_v35 }
 0xdbf   :  { %v1715_v0 = vpack.c.bf16 %v1714_v62, %v1714_v62  ;;  %v1883_v54 = vsub.s32 %v1880_v44, %v2690_v29  ;;  %v2567_v29 = vld [vmem:[%s3011_s0 + $0x8] sm:$0xff] }
 0xdc1   :  { %2380 = vmatmul.mubr.msk.bf16.vlgmr.msra.gmra.mrb[28].mxu0 %vm73_vm0, %v1715_v0  ;;  %2388 = vmatmul.mubr.msk.bf16.vlgmr.msra.gmra.mrb[32].mxu1 %vm73_vm0, %v1715_v0 }
 0xdc2   :  { %2395 = vmatprep.mubr.msk.bf16.mxu0 %vm2593_vm1, %v2592_v16 }
 0xe41   :  { %v1682_v60 = vpop.xlane.xlu1 %1681 }
 0xe42   :  { %2546 = vrsqrt.f32 %v1682_v60  ;;  %vm1688_vm11 = vcmp.eq.f32.partialorder %v1682_v60, inf  ;;  %v1691_v4 = vand.u32 2147483648, %v1682_v60  ;;  %vm1690_vm12 = vcmp.eq.f32.partialorder %v1682_v60, 0.0 }
 0xe45   :  { %v1685_v63 = vpop.xlane.xlu1 %1684 }
 0xe46   :  { %2548 = vrsqrt.f32 %v1685_v63  ;;  %vm1695_vm13 = vcmp.eq.f32.partialorder %v1685_v63, inf  ;;  %v1698_v9 = vand.u32 2147483648, %v1685_v63  ;;  %vm1697_vm14 = vcmp.eq.f32.partialorder %v1685_v63, 0.0 }
 0xe4c   :  { %v2547_v1 = vpop.eup %2546 }
 0xe4d   :  { %v1687_v56 = vmul.f32 %v2547_v1, %v1682_v60 }
 0xe4f   :  { %v1689_v6 = vsel %vm1688_vm11, %v1682_v60, %v1687_v56  ;;  %v1868_v56 = vrot.slane %v2921_v3, %v176_v50 }
 0xe50   :  { %v2549_v7 = vpop.eup %2548  ;;  %v1692_v8 = vsel %vm1690_vm12, %v1691_v4, %v1689_v6 }
 0xe51   :  { %v1700_v21 = vmax.f32 %v1692_v8, 1e-12  ;;  %v1694_v48 = vmul.f32 %v2549_v7, %v1685_v63 }
 0xe53   :  { %v1696_v51 = vsel %vm1695_vm13, %v1685_v63, %v1694_v48  ;;  %2550 = vrcp.f32 %v1700_v21 }
 0xe54   :  { %v1699_v10 = vsel %vm1697_vm14, %v1698_v9, %v1696_v51 }
 0xe55   :  { %v1701_v13 = vmax.f32 %v1699_v10, 1e-12 }
 0xe57   :  { %2552 = vrcp.f32 %v1701_v13 }
 0xe5d   :  { %v2551_v14 = vpop.eup %2550 }
 0xe5e   :  { %v1703_v15 = vmul.f32 %v2551_v14, %v1676_v36 }
 0xe60   :  { %v1706_v17 = vmul.f32 5.656854, %v1703_v15 }
 0xe61   :  { %v2553_v18 = vpop.eup %2552 }
 0xe62   :  { %v1839_v19 = vsel %vm73_vm0, %v1706_v17, 0.0  ;;  %v1705_v20 = vmul.f32 %v2553_v18, %v1677_v41  ;;  %v2484_v41 = vld [vmem:[%s3014_s3 + $0x50] sm:$0xff]   ;;  %s2597_s3 = smov [#allocation2]  }
 0xe63   :  { %1840 = vadd.xlane.f32.xlu1 %v1839_v19  ;;  %2392 = vmatpush3.bf16.msra.mxu0 %v2484_v41  ;;  %s2039_s23 = sshll.u32 %s2597_s3, 4  ;;  %s2040_s23 = int_to_ptr.vmem [resolvable:$true] %s2039_s23 }
 0xe64   :  { %v1707_v22 = vmul.f32 5.656854, %v1705_v20  ;;  %2393 = vmatprep.subr.bf16.mxu0 %v2592_v16  ;;  %v1786_v16 = vrot.slane %v2921_v3, %v556_v53  ;;  %v1874_v53 = vrot.slane %v2921_v3, %v233_v58  ;;  %s2568_s27 = scalar_lea.vmem %s2040_s23, 256  ;;  %p2573_p1 = scmp.lt.s32.totalorder %s2040_s23, %s2040_s23 }
 0xe65   :  { %p2569_p0 = scmp.ne.s32.totalorder %s2040_s23, %s2568_s27  ;;  %p2574_p2 = scmp.lt.s32.totalorder %s2568_s27, %s2568_s27 }
 0xe66   :  { %v1842_v33 = vsel %vm73_vm0, %v1707_v22, 0.0 }
 0xe67   :  { %1843 = vadd.xlane.f32.xlu1 %v1842_v33  ;;  %2394 = vmatpush3.bf16.msra.mxu0 %v2485_v42  ;;  %p2575_p3 = por %p2574_p2, %p2573_p1 }
 0xe69   :  { %p2576_p4 = pnand %p2575_p3, %p2569_p0 }
 0xe94   :  { %v1773_v11 = vpop.f32.mrb[28].mxu0  ;;  %v1833_v37 = vpop.f32.mrb[32].mxu1 }
 0xe95   :  { %v2381_v12 = vpop.f32.mrb[29].mxu0  ;;  %v2389_v38 = vpop.f32.mrb[33].mxu1  ;;  %v1774_v52 = vadd.f32 %v1773_v11, %v1723_v49  ;;  %v1834_v60 = vadd.f32 %v1833_v37, %v1786_v16  ;;  %v1971_v37 = vrot.slane %v2921_v3, %v1503_v55  ;;  %v2566_v49 = vld [vmem:[%s3011_s0] sm:$0xff] }
 0xe96   :  { %v1776_v34 = vpop.f32.mrb[30].mxu0  ;;  %v1836_v39 = vpop.f32.mrb[34].mxu1 }
 0xe97   :  { %v2382_v36 = vpop.f32.mrb[31].mxu0  ;;  %v2390_v40 = vpop.f32.mrb[35].mxu1  ;;  %v1884_v62 = vrot.slane %v1774_v52, %v1883_v54  ;;  %v1925_v1 = vrot.slane %v1834_v60, %v1883_v54 }
 0xe99   :  { %v1885_v63 = vcombine.high %v1884_v62, %v1884_v62  ;;  %v1892_v47 = vrot.slane %v1884_v62, %v1883_v54  ;;  %v1926_v21 = vcombine.high %v1925_v1, %v1925_v1  ;;  %v1933_v48 = vrot.slane %v1925_v1, %v1883_v54 }
 0xe9b   :  { %v1899_v4 = vrot.slane %v1885_v63, %v1883_v54  ;;  %v1902_v6 = vadd.f32 1.0, %v1892_v47  ;;  %v1944_v50 = vrot.slane %v1933_v48, %v2693_v30 }
 0xe9d   :  { %v1903_v51 = vadd.f32 1.0, %v1899_v4  ;;  %v1909_v10 = vrot.slane %v1902_v6, %v2693_v30 }
 0xe9f   :  { %v1913_v19 = vrot.slane %v1903_v51, %v2693_v30 }
 0xef0   :  { %v1841_v23 = vpop.xlane.xlu1 %1840 }
 0xef1   :  { %v1845_v24 = vmul.f32 0.03125, %v1841_v23 }
 0xef3   :  { %v1847_v2 = vsub.f32 %v1706_v17, %v1845_v24  ;;  %v1940_v17 = vrot.slane %v1926_v21, %v1883_v54 }
 0xef4   :  { %v1844_v25 = vpop.xlane.xlu1 %1843 }
 0xef5   :  { %v1846_v5 = vmul.f32 0.03125, %v1844_v25  ;;  %v1849_v26 = vmul.f32 %v1847_v2, %v1847_v2  ;;  %v1948_v58 = vrot.slane %v1940_v17, %v2693_v30 }
 0xef7   :  { %v1848_v27 = vsub.f32 %v1707_v22, %v1846_v5  ;;  %v1851_v28 = vsel %vm73_vm0, %v1849_v26, 0.0 }
 0xef8   :  { %1852 = vadd.xlane.f32.xlu1 %v1851_v28 }
 0xef9   :  { %v1850_v32 = vmul.f32 %v1848_v27, %v1848_v27 }
 0xefb   :  { %v1854_v59 = vsel %vm73_vm0, %v1850_v32, 0.0 }
 0xefc   :  { %1855 = vadd.xlane.f32.xlu1 %v1854_v59 }
 0xf85   :  { %v1853_v45 = vpop.xlane.xlu1 %1852 }
 0xf86   :  { %v1857_v46 = vmul.f32 0.03125, %v1853_v45 }
 0xf88   :  { %v1859_v57 = vadd.f32 1e-05, %v1857_v46 }
 0xf89   :  { %v1856_v31 = vpop.xlane.xlu1 %1855 }
 0xf8a   :  { %2554 = vrsqrt.f32 %v1859_v57  ;;  %v1858_v61 = vmul.f32 0.03125, %v1856_v31 }
 0xf8c   :  { %v1860_v0 = vadd.f32 1e-05, %v1858_v61 }
 0xf8e   :  { %2556 = vrsqrt.f32 %v1860_v0 }
 0xf94   :  { %v2555_v7 = vpop.eup %2554 }
 0xf95   :  { %v1863_v8 = vmul.f32 %v2555_v7, %v1847_v2 }
 0xf97   :  { %v1869_v9 = vmul.f32 %v1868_v56, %v1863_v8 }
 0xf98   :  { %v2557_v13 = vpop.eup %2556 }
 0xf99   :  { %v1864_v14 = vmul.f32 %v2557_v13, %v1848_v27  ;;  %v1875_v15 = vadd.f32 %v1874_v53, %v1869_v9 }
 0xf9b   :  { %v1870_v18 = vmul.f32 %v1868_v56, %v1864_v14  ;;  %v1916_v20 = vmul.f32 %v1909_v10, %v1875_v15 }
 0xf9d   :  { %v1876_v22 = vadd.f32 %v1874_v53, %v1870_v18  ;;  %v1951_v33 = vadd.f32 %v1944_v50, %v1916_v20 }
 0xf9f   :  { %v1917_v23 = vmul.f32 %v1913_v19, %v1876_v22  ;;  %v1953_v24 = vsub.f32 0.0, %v1951_v33 }
 0xfa1   :  { %v1952_v2 = vadd.f32 %v1948_v58, %v1917_v23  ;;  %v1955_v25 = vmul.f32 1.442695, %v1953_v24 }
 0xfa3   :  { %v1954_v5 = vsub.f32 0.0, %v1952_v2  ;;  %2558 = vpow2.f32 %v1955_v25 }
 0xfa5   :  { %v1957_v26 = vmul.f32 1.442695, %v1954_v5 }
 0xfa7   :  { %2560 = vpow2.f32 %v1957_v26 }
 0xfad   :  { %v2559_v27 = vpop.eup %2558 }
 0xfae   :  { %v1959_v28 = vadd.f32 1.0, %v2559_v27 }
 0xfb0   :  { %2562 = vrcp.f32 %v1959_v28 }
 0xfb1   :  { %v2561_v32 = vpop.eup %2560 }
 0xfb2   :  { %v1960_v59 = vadd.f32 1.0, %v2561_v32 }
 0xfb4   :  { %2564 = vrcp.f32 %v1960_v59 }
 0xfba   :  { %v2563_v11 = vpop.eup %2562 }
 0xfbb   :  { %v1965_v34 = vmul.f32 %v2563_v11, %v1951_v33 }
 0xfbe   :  { %v2565_v12 = vpop.eup %2564 }
 0xfbf   :  { %v1966_v36 = vmul.f32 %v2565_v12, %v1952_v2 }
 0xfc1   :  { %v1967_v30 = vpack.c.bf16 %v1966_v36, %v1965_v34 }
 0xfc3   :  { %2396 = vmatmul.mubr.msk.bf16.vlgmr.msra.gmra.mrb[32].mxu0 %vm73_vm0, %v1967_v30 }
0x1096   :  { %v2021_v38 = vpop.f32.mrb[32].mxu0 }
0x1097   :  { %v2022_v39 = vadd.f32 %v2021_v38, %v1971_v37  ;;  %v2397_v40 = vpop.f32.mrb[33].mxu0 }
0x1098   :  { %v2024_v41 = vpop.f32.mrb[34].mxu0 }
0x1099   :  { %v2028_v42 = vmul.f32 0.1, %v2022_v39  ;;  %v2025_v43 = vadd.f32 %v2024_v41, %v1971_v37  ;;  %v2398_v35 = vpop.f32.mrb[35].mxu0 }
0x109b   :  { %v2030_v44 = vadd.f32 %v2566_v49, %v2028_v42  ;;  %v2029_v45 = vmul.f32 0.1, %v2025_v43 }
0x109d   :  { %2032 = vst.msk [vmem:[#allocation2] sm:$0xff] %vm73_vm0, %v2030_v44  ;;  %v2031_v55 = vadd.f32 %v2567_v29, %v2029_v45 }
0x109f   :  { %2033 = vst.msk [vmem:[#allocation2 + $0x8] sm:$0xff] %vm73_vm0, %v2031_v55 }
0x10a0   :  { %2579 = shalt.err (!%p2576_p4)
}
0x10a1   :  { %s2580_s30 = scalar_lea.hbm %s3020_s9, 256 }
0x10a2   :  { %p2581_p5 = scmp.ne.s32.totalorder %s3020_s9, %s2580_s30  ;;  %p2584_p6 = scmp.lt.u32.totalorder %s2580_s30, %s3020_s9 }
0x10a4   :  { %p2586_p7 = pnand %p2584_p6, %p2581_p5 }
0x10a6   :  { %2589 = shalt.err (!%p2586_p7)
}
0x10a7   :  { %s2598_s13 = smov 128   ;;  %s2599_s6 = smov 8  }
0x10a8   :  { %2045 = dma.vmem_to_hbm [thread:$0]  %s2040_s23, 256, %s3020_s9, [#allocation3], %s2598_s13, %s2598_s13, %s2599_s6  }
0x10a9   :  { %2590 = dma.done.wait [#allocation3], 256  }
0x10aa   :  { %2591 = vsyncadd [#allocation3], 4294967040 }
0x10ab   :  { %2049 = vsyncpa [#allocation3], 1 }

</bundles_post_ra>
